<compile_context>
chip_gen: v7x
topology: tpu7x:2x2x1
jax: 0.10.0
libtpu: 0.0.40
codegen_flags: <defaults>
</compile_context>

<pallas_src>
import jax
import jax.numpy as jnp
from jax.experimental import pallas as pl
from jax.experimental.pallas import tpu as pltpu

# TODO(synk): the tokenizer + pretrained transformer encoder (AutoModel) have no clean
# Pallas equivalent; the transformer output (last_hidden_state) is simulated below.

HIDDEN = 768      # gpt-neo-125m hidden_size
NUM_UIDS = 1024   # config.gating.num_uids default
SEQ = 8           # small synthetic sequence length


def gating_linear_kernel(h_ref, w_ref, b_ref, o_ref):
    """Single-step GEMV: scores = h_last @ W^T + b.

    h_ref: (1, HIDDEN)        bf16 last-token hidden row
    w_ref: (HIDDEN, NUM_UIDS) bf16 pre-transposed Linear weight (whole matrix, VMEM-resident)
    b_ref: (1, NUM_UIDS)      f32 bias
    o_ref: (1, NUM_UIDS)      f32 scores (single lane-dense store)
    """
    acc = jnp.dot(h_ref[...], w_ref[...], preferred_element_type=jnp.float32)
    o_ref[...] = acc + b_ref[...]


def gating_forward(last_hidden_state, w_t_bf16, bias):
    """last_hidden_state: (SEQ, HIDDEN) f32 transformer output for one sequence;
    w_t_bf16: (HIDDEN, NUM_UIDS) bf16 (Linear weight, pre-transposed);
    bias: (NUM_UIDS,) f32.  Returns f32 scores of shape (NUM_UIDS,)."""
    S, H = last_hidden_state.shape
    H2, N = w_t_bf16.shape
    assert H == H2

    # last_hidden_state[0, -1, :] — slice the final token in the wrapper so only a (1, H)
    # row ships to VMEM (cast to bf16 to match the MXU input dtype).
    h_last = last_hidden_state[S - 1:S, :].astype(jnp.bfloat16)   # (1, H)
    bias2d = bias.reshape(1, N)

    vmem = pl.BlockSpec(memory_space=pltpu.MemorySpace.VMEM)
    out = pl.pallas_call(
        gating_linear_kernel,
        out_shape=jax.ShapeDtypeStruct((1, N), jnp.float32),
        in_specs=[vmem, vmem, vmem],
        out_specs=vmem,
    )(h_last, w_t_bf16, bias2d)
    return out.reshape(N)  # scores for each uid, shape (num_uids,)


def init_params(key, hidden, num_uids):
    """Deterministic init matching torch.nn.Linear(hidden, num_uids) semantics:
    W ~ U(-1/sqrt(hidden), 1/sqrt(hidden)), b ~ same."""
    kw, kb = jax.random.split(key)
    bound = 1.0 / (hidden ** 0.5)
    w = jax.random.uniform(kw, (num_uids, hidden), jnp.float32, -bound, bound)
    b = jax.random.uniform(kb, (num_uids,), jnp.float32, -bound, bound)
    return w, b


if __name__ == "__main__":
    key = jax.random.PRNGKey(0)
    k_hs, k_params = jax.random.split(key)

    # Synthetic "last_hidden_state" from the (untranslated) transformer encoder.
    hidden_states = jax.random.normal(k_hs, (SEQ, HIDDEN), jnp.float32)

    w, b = init_params(k_params, HIDDEN, NUM_UIDS)
    w_t_bf16 = w.T.astype(jnp.bfloat16)   # pre-transpose + bf16: halves streamed weight bytes

    fwd = jax.jit(gating_forward)
    scores = fwd(hidden_states, w_t_bf16, b)
    scores = jax.block_until_ready(scores)
    assert scores.shape == (NUM_UIDS,)
    assert scores.dtype == jnp.float32

    # Reference 1: same bf16 inputs, f32 accumulate (tight tolerance).
    h_bf16 = hidden_states[SEQ - 1:SEQ, :].astype(jnp.bfloat16)
    ref_bf16 = (jnp.dot(h_bf16, w.T.astype(jnp.bfloat16),
                        preferred_element_type=jnp.float32) + b).reshape(NUM_UIDS)
    assert jnp.allclose(scores, ref_bf16, atol=1e-3, rtol=1e-3)

    # Reference 2: full-precision f32 forward (loose tolerance covers the bf16 weight cast).
    ref_f32 = hidden_states[-1, :] @ w.T + b
    assert jnp.allclose(scores, ref_f32, atol=5e-2, rtol=5e-2)

    print("KERNEL_OK")
</pallas_src>

<mosaic_0001>
module attributes {stable_mosaic.version = 11 : i64} {
  func.func @gating_linear_kernel(%arg0: memref<1x768xbf16, #tpu.memory_space<vmem>>, %arg1: memref<768x1024xbf16, #tpu.memory_space<vmem>>, %arg2: memref<1x1024xf32, #tpu.memory_space<vmem>>, %arg3: memref<1x1024xf32, #tpu.memory_space<vmem>>) attributes {dimension_semantics = [], scalar_prefetch = 0 : i64, scratch_operands = 0 : i64, tpu.core_type = #tpu.core_type<tc>} {
    %c0 = arith.constant 0 : index
    %c0_0 = arith.constant 0 : index
    %0 = vector.load %arg0[%c0, %c0_0] : memref<1x768xbf16, #tpu.memory_space<vmem>>, vector<1x768xbf16>
    %c0_1 = arith.constant 0 : index
    %c0_2 = arith.constant 0 : index
    %1 = vector.load %arg1[%c0_1, %c0_2] : memref<768x1024xbf16, #tpu.memory_space<vmem>>, vector<768x1024xbf16>
    %cst = arith.constant dense<0.000000e+00> : vector<1x1024xf32>
    %2 = tpu.matmul %0, %1, %cst {dimension_numbers = #tpu.dot_dimension_numbers<[1], [0], [0], [1], [0, 0, 1, 1], [], []>} : vector<1x768xbf16>, vector<768x1024xbf16>, vector<1x1024xf32> -> vector<1x1024xf32>
    %c0_3 = arith.constant 0 : index
    %c0_4 = arith.constant 0 : index
    %3 = vector.load %arg2[%c0_3, %c0_4] : memref<1x1024xf32, #tpu.memory_space<vmem>>, vector<1x1024xf32>
    %4 = arith.addf %2, %3 : vector<1x1024xf32>
    %c0_5 = arith.constant 0 : index
    %c0_6 = arith.constant 0 : index
    %5 = vector.load %arg3[%c0_5, %c0_6] : memref<1x1024xf32, #tpu.memory_space<vmem>>, vector<1x1024xf32>
    tpu.vector_store %arg3[%c0_5, %c0_6], %4 {strides = array<i32>} : memref<1x1024xf32, #tpu.memory_space<vmem>>, vector<1x1024xf32>,
    return
  }
}

</mosaic_0001>

<bundles_post_ra>
// kernel: gating_forward.1
= control target key start
LH: loop header
LB: loop body
LE: loop exit
PB: predicated region body
PF: predicated region fallthrough
CT: control target
= control target key end

     0   :  { %8 = vsyncpa [#allocation3], 0  ;;  %s3657_s0 = inlined_call_operand.vmem [shape: bf16[1,768], index: 0, kind: input, shape index: {}]   ;;  %s3658_s1 = inlined_call_operand.hbm [shape: bf16[768,1024], index: 1, kind: input, shape index: {}]   ;;  %s3659_s2 = inlined_call_operand.hbm [shape: f32[1,1024], index: 2, kind: input, shape index: {}]   ;;  %s3660_s3 = inlined_call_operand.hbm [shape: f32[1,1024], index: 3, kind: output, shape index: {}]  }
   0x1   :  { %9 = vsyncpa [#allocation6], 0 }
   0x2   :  { %10 = vsyncpa [#allocation4], 0  ;;  %s3512_s12 = smov [#allocation2]   ;;  %s3440_s16 = scalar_lea.hbm %s3658_s1, 49152 }
   0x3   :  { %s18_s13 = sshll.u32 %s3512_s12, 4  ;;  %p3441_p0 = scmp.ne.s32.totalorder %s3658_s1, %s3440_s16  ;;  %s19_s13 = int_to_ptr.vmem [resolvable:$true] %s18_s13 }
   0x4   :  { %p3444_p1 = scmp.lt.u32.totalorder %s3440_s16, %s3658_s1 }
   0x6   :  { %p3446_p2 = pnand %p3444_p1, %p3441_p0 }
   0x8   :  { %3449 = shalt.err (!%p3446_p2)
}
   0x9   :  { %s3450_s21 = scalar_lea.vmem %s19_s13, 49152  ;;  %p3455_p4 = scmp.lt.s32.totalorder %s19_s13, %s19_s13 }
   0xa   :  { %p3451_p3 = scmp.ne.s32.totalorder %s19_s13, %s3450_s21  ;;  %p3456_p5 = scmp.lt.s32.totalorder %s3450_s21, %s3450_s21 }
   0xc   :  { %p3457_p6 = por %p3456_p5, %p3455_p4 }
   0xe   :  { %p3458_p7 = pnand %p3457_p6, %p3451_p3 }
  0x10   :  { %3461 = shalt.err (!%p3458_p7)
}
  0x11   :  { %s3513_s22 = smov 512   ;;  %s3514_s23 = smov 32  }
  0x12   :  { %24 = dma.hbm_to_vmem [thread:$0]  %s3658_s1, 49152, %s19_s13, [#allocation3], %s3513_s22, %s3513_s22, %s3514_s23  }
  0x13   :  { %s3515_s26 = smov [#allocation5]   ;;  %s3462_s30 = scalar_lea.hbm %s3659_s2, 128 }
  0x14   :  { %s31_s27 = sshll.u32 %s3515_s26, 4  ;;  %p3463_p8 = scmp.ne.s32.totalorder %s3659_s2, %s3462_s30  ;;  %s32_s27 = int_to_ptr.vmem [resolvable:$true] %s31_s27 }
  0x15   :  { %p3466_p9 = scmp.lt.u32.totalorder %s3462_s30, %s3659_s2 }
  0x17   :  { %p3468_p10 = pnand %p3466_p9, %p3463_p8 }
  0x19   :  { %3471 = shalt.err (!%p3468_p10)
}
  0x1a   :  { %s3472_s8 = scalar_lea.vmem %s32_s27, 128  ;;  %p3477_p12 = scmp.lt.s32.totalorder %s32_s27, %s32_s27 }
  0x1b   :  { %p3473_p11 = scmp.ne.s32.totalorder %s32_s27, %s3472_s8  ;;  %p3478_p13 = scmp.lt.s32.totalorder %s3472_s8, %s3472_s8 }
  0x1d   :  { %p3479_p0 = por %p3478_p13, %p3477_p12 }
  0x1f   :  { %p3480_p1 = pnand %p3479_p0, %p3473_p11 }
  0x21   :  { %3483 = shalt.err (!%p3480_p1)
}
  0x22   :  { %34 = dma.hbm_to_vmem [thread:$0]  %s3659_s2, 128, %s32_s27, [#allocation6]  }
  0x23   :  { %3506 = dma.done.wait [#allocation3], 49152  }
  0x24   :  { %3507 = vsyncadd [#allocation3], 4294918144 }
  0x25   :  { %3508 = dma.done.wait [#allocation6], 128  }
  0x26   :  { %3509 = vsyncadd [#allocation6], 4294967168  ;;  %v42_v0 = vld [vmem:[#allocation2] sm:$0xff]  ;;  %v43_v2 = vld [vmem:[#allocation2 + $0x8] sm:$0xff]  ;;  %v3516_v32 = vmov 1966171168   ;;  %v432_v34 = vlaneseq }
  0x27   :  { %v46_v1 = vld [vmem:[#allocation2 + $0x20] sm:$0xff]  ;;  %v47_v4 = vld [vmem:[#allocation2 + $0x28] sm:$0xff]  ;;  %v430_v33 = vunpack.c.l.s4 %v3516_v32 }
  0x28   :  { %v3010_v3 = vcombine.high %v42_v0, %v46_v1  ;;  %v3009_v5 = vcombine.low %v42_v0, %v46_v1  ;;  %v50_v6 = vld [vmem:[#allocation2 + $0x40] sm:$0xff]  ;;  %v3012_v8 = vcombine.high %v43_v2, %v47_v4  ;;  %v3011_v9 = vcombine.low %v43_v2, %v47_v4  ;;  %v51_v11 = vld [vmem:[#allocation2 + $0x48] sm:$0xff] }
  0x29   :  { %v54_v7 = vld [vmem:[#allocation2 + $0x60] sm:$0xff]  ;;  %v55_v12 = vld [vmem:[#allocation2 + $0x68] sm:$0xff]  ;;  %v431_v43 = vunpack.c.0.s8 %v430_v33  ;;  %v3562_v44 = vshrl.u32 %v432_v34, 7 }
  0x2a   :  { %v3018_v10 = vcombine.high %v50_v6, %v54_v7  ;;  %v58_v13 = vld [vmem:[#allocation2 + $0x80] sm:$0xff]  ;;  %2442 = vmatprep.subr.bf16.mxu0 %v3010_v3  ;;  %v3020_v14 = vcombine.high %v51_v11, %v55_v12  ;;  %v59_v16 = vld [vmem:[#allocation2 + $0x88] sm:$0xff]  ;;  %2565 = vmatprep.subr.bf16.mxu1 %v3012_v8  ;;  %v3017_v18 = vcombine.low %v50_v6, %v54_v7 }
  0x2b   :  { %v62_v15 = vld [vmem:[#allocation2 + $0xa0] sm:$0xff]  ;;  %v63_v17 = vld [vmem:[#allocation2 + $0xa8] sm:$0xff]  ;;  %2443 = vmatpush1.bf16.msra.mxu0 %v3009_v5  ;;  %2566 = vmatpush1.bf16.msra.mxu1 %v3011_v9  ;;  %v3019_v19 = vcombine.low %v51_v11, %v55_v12  ;;  %v3565_v53 = vsub.s32 %v431_v43, %v3562_v44 }
  0x2c   :  { %2444 = vmatprep.subr.bf16.mxu0 %v3018_v10  ;;  %v3026_v20 = vcombine.high %v58_v13, %v62_v15  ;;  %2567 = vmatprep.subr.bf16.mxu1 %v3020_v14  ;;  %v3028_v21 = vcombine.high %v59_v16, %v63_v17  ;;  %v66_v22 = vld [vmem:[#allocation2 + $0xc0] sm:$0xff]  ;;  %v67_v24 = vld [vmem:[#allocation2 + $0xc8] sm:$0xff]  ;;  %v3025_v26 = vcombine.low %v58_v13, %v62_v15 }
  0x2d   :  { %v70_v23 = vld [vmem:[#allocation2 + $0xe0] sm:$0xff]  ;;  %v71_v25 = vld [vmem:[#allocation2 + $0xe8] sm:$0xff]  ;;  %v3027_v27 = vcombine.low %v59_v16, %v63_v17 }
  0x2e   :  { %v3034_v28 = vcombine.high %v66_v22, %v70_v23  ;;  %v3036_v29 = vcombine.high %v67_v24, %v71_v25  ;;  %v74_v30 = vld [vmem:[#allocation2 + $0x100] sm:$0xff]  ;;  %v75_v35 = vld [vmem:[#allocation2 + $0x108] sm:$0xff]  ;;  %v3033_v37 = vcombine.low %v66_v22, %v70_v23  ;;  %v3035_v38 = vcombine.low %v67_v24, %v71_v25 }
  0x2f   :  { %2445 = vmatpush1.bf16.msra.mxu0 %v3017_v18  ;;  %2568 = vmatpush1.bf16.msra.mxu1 %v3019_v19  ;;  %v78_v31 = vld [vmem:[#allocation2 + $0x120] sm:$0xff]  ;;  %v79_v36 = vld [vmem:[#allocation2 + $0x128] sm:$0xff] }
  0x30   :  { %2446 = vmatprep.subr.bf16.mxu0 %v3026_v20  ;;  %2569 = vmatprep.subr.bf16.mxu1 %v3028_v21  ;;  %v3042_v39 = vcombine.high %v74_v30, %v78_v31  ;;  %v3044_v40 = vcombine.high %v75_v35, %v79_v36  ;;  %v82_v41 = vld [vmem:[#allocation2 + $0x140] sm:$0xff]  ;;  %v83_v45 = vld [vmem:[#allocation2 + $0x148] sm:$0xff]  ;;  %v3041_v47 = vcombine.low %v74_v30, %v78_v31 }
  0x31   :  { %v86_v42 = vld [vmem:[#allocation2 + $0x160] sm:$0xff]  ;;  %v87_v46 = vld [vmem:[#allocation2 + $0x168] sm:$0xff]  ;;  %v3043_v48 = vcombine.low %v75_v35, %v79_v36 }
  0x32   :  { %v3050_v49 = vcombine.high %v82_v41, %v86_v42  ;;  %v3052_v50 = vcombine.high %v83_v45, %v87_v46  ;;  %v90_v51 = vld [vmem:[#allocation2 + $0x180] sm:$0xff]  ;;  %v91_v54 = vld [vmem:[#allocation2 + $0x188] sm:$0xff]  ;;  %v3049_v56 = vcombine.low %v82_v41, %v86_v42  ;;  %v3051_v57 = vcombine.low %v83_v45, %v87_v46 }
  0x33   :  { %2447 = vmatpush1.bf16.msra.mxu0 %v3025_v26  ;;  %2570 = vmatpush1.bf16.msra.mxu1 %v3027_v27  ;;  %v94_v52 = vld [vmem:[#allocation2 + $0x1a0] sm:$0xff]  ;;  %v95_v55 = vld [vmem:[#allocation2 + $0x1a8] sm:$0xff] }
  0x34   :  { %2448 = vmatprep.subr.bf16.mxu0 %v3034_v28  ;;  %2571 = vmatprep.subr.bf16.mxu1 %v3036_v29  ;;  %v3058_v58 = vcombine.high %v90_v51, %v94_v52  ;;  %v3570_v59 = vld [vmem:[%s3657_s0] sm:$0x3f]  ;;  %v3060_v60 = vcombine.high %v91_v54, %v95_v55  ;;  %v99_v0 = vld [vmem:[#allocation2 + $0x1c8] sm:$0xff]  ;;  %v3057_v2 = vcombine.low %v90_v51, %v94_v52  ;;  %s3517_s0 = smov [#allocation7]  }
  0x35   :  { %v98_v61 = vld [vmem:[#allocation2 + $0x1c0] sm:$0xff]  ;;  %v3574_v63 = vrot.slane %v3570_v59, %v3565_v53  ;;  %v103_v1 = vld [vmem:[#allocation2 + $0x1e8] sm:$0xff]  ;;  %v3059_v4 = vcombine.low %v91_v54, %v95_v55  ;;  %s2999_s11 = sshll.u32 %s3517_s0, 4  ;;  %s3000_s11 = int_to_ptr.vmem [resolvable:$true] %s2999_s11 }
  0x36   :  { %v102_v62 = vld [vmem:[#allocation2 + $0x1e0] sm:$0xff]  ;;  %v3068_v6 = vcombine.high %v99_v0, %v103_v1  ;;  %v107_v10 = vld [vmem:[#allocation2 + $0x208] sm:$0xff]  ;;  %v3067_v13 = vcombine.low %v99_v0, %v103_v1  ;;  %s3484_s12 = scalar_lea.vmem %s3000_s11, 128  ;;  %p3489_p3 = scmp.lt.s32.totalorder %s3000_s11, %s3000_s11 }
  0x37   :  { %2449 = vmatpush1.bf16.msra.mxu0 %v3033_v37  ;;  %2572 = vmatpush1.bf16.msra.mxu1 %v3035_v38  ;;  %v443_v3 = vcombine.high %v3574_v63, %v3574_v63  ;;  %v3066_v5 = vcombine.high %v98_v61, %v102_v62  ;;  %v106_v7 = vld [vmem:[#allocation2 + $0x200] sm:$0xff]  ;;  %v111_v11 = vld [vmem:[#allocation2 + $0x228] sm:$0xff]  ;;  %v3065_v12 = vcombine.low %v98_v61, %v102_v62  ;;  %p3485_p2 = scmp.ne.s32.totalorder %s3000_s11, %s3484_s12  ;;  %p3490_p4 = scmp.lt.s32.totalorder %s3484_s12, %s3484_s12 }
  0x38   :  { %2450 = vmatprep.subr.bf16.mxu0 %v3042_v39  ;;  %2573 = vmatprep.subr.bf16.mxu1 %v3044_v40  ;;  %v110_v8 = vld [vmem:[#allocation2 + $0x220] sm:$0xff]  ;;  %v3076_v15 = vcombine.high %v107_v10, %v111_v11  ;;  %v115_v18 = vld [vmem:[#allocation2 + $0x248] sm:$0xff]  ;;  %v3075_v21 = vcombine.low %v107_v10, %v111_v11 }
  0x39   :  { %v3579_v9 = vrot.slane %v443_v3, %v3565_v53  ;;  %v3074_v14 = vcombine.high %v106_v7, %v110_v8  ;;  %v114_v16 = vld [vmem:[#allocation2 + $0x240] sm:$0xff]  ;;  %v119_v19 = vld [vmem:[#allocation2 + $0x268] sm:$0xff]  ;;  %v3073_v20 = vcombine.low %v106_v7, %v110_v8  ;;  %p3491_p5 = por %p3490_p4, %p3489_p3 }
  0x3a   :  { %v118_v17 = vld [vmem:[#allocation2 + $0x260] sm:$0xff]  ;;  %v3084_v23 = vcombine.high %v115_v18, %v119_v19  ;;  %v123_v26 = vld [vmem:[#allocation2 + $0x288] sm:$0xff]  ;;  %v3083_v29 = vcombine.low %v115_v18, %v119_v19 }
  0x3b   :  { %2451 = vmatpush1.bf16.msra.mxu0 %v3041_v47  ;;  %2574 = vmatpush1.bf16.msra.mxu1 %v3043_v48  ;;  %v3082_v22 = vcombine.high %v114_v16, %v118_v17  ;;  %v122_v24 = vld [vmem:[#allocation2 + $0x280] sm:$0xff]  ;;  %v127_v27 = vld [vmem:[#allocation2 + $0x2a8] sm:$0xff]  ;;  %v3081_v28 = vcombine.low %v114_v16, %v118_v17  ;;  %p3492_p6 = pnand %p3491_p5, %p3485_p2 }
  0x3c   :  { %2452 = vmatprep.subr.bf16.mxu0 %v3050_v49  ;;  %2575 = vmatprep.subr.bf16.mxu1 %v3052_v50  ;;  %v126_v25 = vld [vmem:[#allocation2 + $0x2a0] sm:$0xff]  ;;  %v3092_v31 = vcombine.high %v123_v26, %v127_v27  ;;  %v131_v34 = vld [vmem:[#allocation2 + $0x2c8] sm:$0xff]  ;;  %v3091_v37 = vcombine.low %v123_v26, %v127_v27 }
  0x3d   :  { %2474 = vmatprep.mubr.bf16.mxu0 %v3579_v9  ;;  %2597 = vmatprep.mubr.bf16.mxu1 %v3579_v9  ;;  %v3090_v30 = vcombine.high %v122_v24, %v126_v25  ;;  %v130_v32 = vld [vmem:[#allocation2 + $0x2c0] sm:$0xff]  ;;  %v135_v35 = vld [vmem:[#allocation2 + $0x2e8] sm:$0xff]  ;;  %v3089_v36 = vcombine.low %v122_v24, %v126_v25 }
  0x3e   :  { %v134_v33 = vld [vmem:[#allocation2 + $0x2e0] sm:$0xff]  ;;  %v3100_v39 = vcombine.high %v131_v34, %v135_v35  ;;  %v139_v42 = vld [vmem:[#allocation2 + $0x308] sm:$0xff]  ;;  %v3099_v46 = vcombine.low %v131_v34, %v135_v35 }
  0x3f   :  { %2453 = vmatpush1.bf16.msra.mxu0 %v3049_v56  ;;  %2576 = vmatpush1.bf16.msra.mxu1 %v3051_v57  ;;  %v3098_v38 = vcombine.high %v130_v32, %v134_v33  ;;  %v138_v40 = vld [vmem:[#allocation2 + $0x300] sm:$0xff]  ;;  %v143_v43 = vld [vmem:[#allocation2 + $0x328] sm:$0xff]  ;;  %v3097_v45 = vcombine.low %v130_v32, %v134_v33  ;;  %v3589_v32 = vcombine.high %v3579_v9, %v3579_v9 }
  0x40   :  { %2454 = vmatprep.subr.bf16.mxu0 %v3058_v58  ;;  %2577 = vmatprep.subr.bf16.mxu1 %v3060_v60  ;;  %v142_v41 = vld [vmem:[#allocation2 + $0x320] sm:$0xff]  ;;  %v3108_v48 = vcombine.high %v139_v42, %v143_v43  ;;  %v147_v51 = vld [vmem:[#allocation2 + $0x348] sm:$0xff]  ;;  %v3107_v55 = vcombine.low %v139_v42, %v143_v43 }
  0x41   :  { %v3106_v47 = vcombine.high %v138_v40, %v142_v41  ;;  %v146_v49 = vld [vmem:[#allocation2 + $0x340] sm:$0xff]  ;;  %v151_v52 = vld [vmem:[#allocation2 + $0x368] sm:$0xff]  ;;  %v3105_v54 = vcombine.low %v138_v40, %v142_v41 }
  0x42   :  { %v150_v50 = vld [vmem:[#allocation2 + $0x360] sm:$0xff]  ;;  %v3116_v57 = vcombine.high %v147_v51, %v151_v52  ;;  %v155_v61 = vld [vmem:[#allocation2 + $0x388] sm:$0xff]  ;;  %v3115_v1 = vcombine.low %v147_v51, %v151_v52 }
  0x43   :  { %2455 = vmatpush1.bf16.msra.mxu0 %v3057_v2  ;;  %2578 = vmatpush1.bf16.msra.mxu1 %v3059_v4  ;;  %v3114_v56 = vcombine.high %v146_v49, %v150_v50  ;;  %v154_v58 = vld [vmem:[#allocation2 + $0x380] sm:$0xff]  ;;  %v159_v62 = vld [vmem:[#allocation2 + $0x3a8] sm:$0xff]  ;;  %v3113_v0 = vcombine.low %v146_v49, %v150_v50 }
  0x44   :  { %2456 = vmatprep.subr.bf16.mxu0 %v3066_v5  ;;  %2579 = vmatprep.subr.bf16.mxu1 %v3068_v6  ;;  %v158_v60 = vld [vmem:[#allocation2 + $0x3a0] sm:$0xff]  ;;  %v3124_v3 = vcombine.high %v155_v61, %v159_v62  ;;  %v163_v6 = vld [vmem:[#allocation2 + $0x3c8] sm:$0xff]  ;;  %v3123_v10 = vcombine.low %v155_v61, %v159_v62 }
  0x45   :  { %v3122_v2 = vcombine.high %v154_v58, %v158_v60  ;;  %v162_v4 = vld [vmem:[#allocation2 + $0x3c0] sm:$0xff]  ;;  %v167_v7 = vld [vmem:[#allocation2 + $0x3e8] sm:$0xff]  ;;  %v3121_v8 = vcombine.low %v154_v58, %v158_v60 }
  0x46   :  { %v166_v5 = vld [vmem:[#allocation2 + $0x3e0] sm:$0xff]  ;;  %v175_v16 = vld [vmem:[#allocation2 + $0x428] sm:$0xff]  ;;  %v3131_v18 = vcombine.low %v163_v6, %v167_v7 }
  0x47   :  { %2457 = vmatpush1.bf16.msra.mxu0 %v3065_v12  ;;  %2580 = vmatpush1.bf16.msra.mxu1 %v3067_v13  ;;  %v3130_v11 = vcombine.high %v162_v4, %v166_v5  ;;  %v3132_v12 = vcombine.high %v163_v6, %v167_v7  ;;  %v170_v13 = vld [vmem:[#allocation2 + $0x400] sm:$0xff]  ;;  %v3129_v17 = vcombine.low %v162_v4, %v166_v5  ;;  %v179_v24 = vld [vmem:[#allocation2 + $0x448] sm:$0xff] }
  0x48   :  { %2458 = vmatprep.subr.bf16.mxu0 %v3074_v14  ;;  %2581 = vmatprep.subr.bf16.mxu1 %v3076_v15  ;;  %v174_v14 = vld [vmem:[#allocation2 + $0x420] sm:$0xff]  ;;  %v171_v15 = vld [vmem:[#allocation2 + $0x408] sm:$0xff] }
  0x49   :  { %v3138_v19 = vcombine.high %v170_v13, %v174_v14  ;;  %v183_v25 = vld [vmem:[#allocation2 + $0x468] sm:$0xff]  ;;  %v3137_v26 = vcombine.low %v170_v13, %v174_v14  ;;  %v3139_v27 = vcombine.low %v171_v15, %v175_v16 }
  0x4a   :  { %v191_v33 = vld [vmem:[#allocation2 + $0x4a8] sm:$0xff]  ;;  %v3147_v35 = vcombine.low %v179_v24, %v183_v25 }
  0x4b   :  { %2459 = vmatpush1.bf16.msra.mxu0 %v3073_v20  ;;  %2582 = vmatpush1.bf16.msra.mxu1 %v3075_v21  ;;  %v3140_v20 = vcombine.high %v171_v15, %v175_v16  ;;  %v178_v21 = vld [vmem:[#allocation2 + $0x440] sm:$0xff]  ;;  %v195_v40 = vld [vmem:[#allocation2 + $0x4c8] sm:$0xff] }
  0x4c   :  { %2460 = vmatprep.subr.bf16.mxu0 %v3082_v22  ;;  %2583 = vmatprep.subr.bf16.mxu1 %v3084_v23  ;;  %v182_v22 = vld [vmem:[#allocation2 + $0x460] sm:$0xff]  ;;  %v3585_v23 = vrot.slane %v3574_v63, %v3565_v53  ;;  %v187_v63 = vld [vmem:[#allocation2 + $0x488] sm:$0xff] }
  0x4d   :  { %v3145_v34 = vcombine.low %v178_v21, %v182_v22  ;;  %v199_v41 = vld [vmem:[#allocation2 + $0x4e8] sm:$0xff]  ;;  %v3155_v43 = vcombine.low %v187_v63, %v191_v33 }
  0x4e   :  { %v203_v49 = vld [vmem:[#allocation2 + $0x508] sm:$0xff]  ;;  %v3163_v52 = vcombine.low %v195_v40, %v199_v41 }
  0x4f   :  { %2461 = vmatpush1.bf16.msra.mxu0 %v3081_v28  ;;  %2584 = vmatpush1.bf16.msra.mxu1 %v3083_v29  ;;  %v3146_v28 = vcombine.high %v178_v21, %v182_v22  ;;  %v3148_v29 = vcombine.high %v179_v24, %v183_v25  ;;  %v207_v50 = vld [vmem:[#allocation2 + $0x528] sm:$0xff] }
  0x50   :  { %2462 = vmatprep.subr.bf16.mxu0 %v3090_v30  ;;  %2585 = vmatprep.subr.bf16.mxu1 %v3092_v31  ;;  %v186_v30 = vld [vmem:[#allocation2 + $0x480] sm:$0xff]  ;;  %v211_v58 = vld [vmem:[#allocation2 + $0x548] sm:$0xff]  ;;  %v3171_v62 = vcombine.low %v203_v49, %v207_v50 }
  0x51   :  { %v190_v31 = vld [vmem:[#allocation2 + $0x4a0] sm:$0xff]  ;;  %v215_v60 = vld [vmem:[#allocation2 + $0x568] sm:$0xff] }
  0x52   :  { %v3153_v42 = vcombine.low %v186_v30, %v190_v31  ;;  %v219_v4 = vld [vmem:[#allocation2 + $0x588] sm:$0xff]  ;;  %v3179_v7 = vcombine.low %v211_v58, %v215_v60 }
  0x53   :  { %2463 = vmatpush1.bf16.msra.mxu0 %v3089_v36  ;;  %2586 = vmatpush1.bf16.msra.mxu1 %v3091_v37  ;;  %v3154_v36 = vcombine.high %v186_v30, %v190_v31  ;;  %v3156_v37 = vcombine.high %v187_v63, %v191_v33  ;;  %v223_v5 = vld [vmem:[#allocation2 + $0x5a8] sm:$0xff] }
  0x54   :  { %2464 = vmatprep.subr.bf16.mxu0 %v3098_v38  ;;  %2587 = vmatprep.subr.bf16.mxu1 %v3100_v39  ;;  %v194_v38 = vld [vmem:[#allocation2 + $0x4c0] sm:$0xff]  ;;  %v227_v13 = vld [vmem:[#allocation2 + $0x5c8] sm:$0xff]  ;;  %v3187_v16 = vcombine.low %v219_v4, %v223_v5 }
  0x55   :  { %v198_v39 = vld [vmem:[#allocation2 + $0x4e0] sm:$0xff]  ;;  %v231_v14 = vld [vmem:[#allocation2 + $0x5e8] sm:$0xff] }
  0x56   :  { %v3161_v51 = vcombine.low %v194_v38, %v198_v39  ;;  %v235_v21 = vld [vmem:[#allocation2 + $0x608] sm:$0xff]  ;;  %v3195_v25 = vcombine.low %v227_v13, %v231_v14 }
  0x57   :  { %2465 = vmatpush1.bf16.msra.mxu0 %v3097_v45  ;;  %2588 = vmatpush1.bf16.msra.mxu1 %v3099_v46  ;;  %v3162_v45 = vcombine.high %v194_v38, %v198_v39  ;;  %v3164_v46 = vcombine.high %v195_v40, %v199_v41  ;;  %v239_v22 = vld [vmem:[#allocation2 + $0x628] sm:$0xff] }
  0x58   :  { %2466 = vmatprep.subr.bf16.mxu0 %v3106_v47  ;;  %2589 = vmatprep.subr.bf16.mxu1 %v3108_v48  ;;  %v202_v47 = vld [vmem:[#allocation2 + $0x500] sm:$0xff]  ;;  %v243_v30 = vld [vmem:[#allocation2 + $0x648] sm:$0xff]  ;;  %v3203_v33 = vcombine.low %v235_v21, %v239_v22 }
  0x59   :  { %v206_v48 = vld [vmem:[#allocation2 + $0x520] sm:$0xff]  ;;  %v247_v31 = vld [vmem:[#allocation2 + $0x668] sm:$0xff] }
  0x5a   :  { %v3169_v61 = vcombine.low %v202_v47, %v206_v48  ;;  %v251_v38 = vld [vmem:[#allocation2 + $0x688] sm:$0xff]  ;;  %v3211_v41 = vcombine.low %v243_v30, %v247_v31 }
  0x5b   :  { %2467 = vmatpush1.bf16.msra.mxu0 %v3105_v54  ;;  %2590 = vmatpush1.bf16.msra.mxu1 %v3107_v55  ;;  %v3170_v54 = vcombine.high %v202_v47, %v206_v48  ;;  %v3172_v55 = vcombine.high %v203_v49, %v207_v50  ;;  %v255_v39 = vld [vmem:[#allocation2 + $0x6a8] sm:$0xff] }
  0x5c   :  { %2468 = vmatprep.subr.bf16.mxu0 %v3114_v56  ;;  %2591 = vmatprep.subr.bf16.mxu1 %v3116_v57  ;;  %v210_v56 = vld [vmem:[#allocation2 + $0x540] sm:$0xff]  ;;  %v259_v47 = vld [vmem:[#allocation2 + $0x6c8] sm:$0xff]  ;;  %v3219_v50 = vcombine.low %v251_v38, %v255_v39 }
  0x5d   :  { %v214_v57 = vld [vmem:[#allocation2 + $0x560] sm:$0xff]  ;;  %v263_v48 = vld [vmem:[#allocation2 + $0x6e8] sm:$0xff] }
  0x5e   :  { %v3177_v6 = vcombine.low %v210_v56, %v214_v57 }
  0x5f   :  { %2469 = vmatpush1.bf16.msra.mxu0 %v3113_v0  ;;  %2592 = vmatpush1.bf16.msra.mxu1 %v3115_v1  ;;  %v3178_v0 = vcombine.high %v210_v56, %v214_v57  ;;  %v3180_v1 = vcombine.high %v211_v58, %v215_v60  ;;  %v267_v56 = vld [vmem:[#allocation2 + $0x708] sm:$0xff]  ;;  %v3227_v60 = vcombine.low %v259_v47, %v263_v48 }
  0x60   :  { %2470 = vmatprep.subr.bf16.mxu0 %v3122_v2  ;;  %2593 = vmatprep.subr.bf16.mxu1 %v3124_v3  ;;  %v218_v2 = vld [vmem:[#allocation2 + $0x580] sm:$0xff]  ;;  %v271_v57 = vld [vmem:[#allocation2 + $0x728] sm:$0xff] }
  0x61   :  { %v222_v3 = vld [vmem:[#allocation2 + $0x5a0] sm:$0xff] }
  0x62   :  { %v3185_v15 = vcombine.low %v218_v2, %v222_v3 }
  0x63   :  { %2471 = vmatpush1.bf16.msra.mxu0 %v3121_v8  ;;  %2594 = vmatpush1.bf16.msra.mxu1 %v3123_v10  ;;  %v3186_v8 = vcombine.high %v218_v2, %v222_v3  ;;  %v3188_v10 = vcombine.high %v219_v4, %v223_v5  ;;  %v275_v2 = vld [vmem:[#allocation2 + $0x748] sm:$0xff]  ;;  %v3235_v5 = vcombine.low %v267_v56, %v271_v57 }
  0x64   :  { %2472 = vmatprep.subr.bf16.mxu0 %v3130_v11  ;;  %2595 = vmatprep.subr.bf16.mxu1 %v3132_v12  ;;  %v226_v11 = vld [vmem:[#allocation2 + $0x5c0] sm:$0xff]  ;;  %v279_v3 = vld [vmem:[#allocation2 + $0x768] sm:$0xff] }
  0x65   :  { %v230_v12 = vld [vmem:[#allocation2 + $0x5e0] sm:$0xff] }
  0x66   :  { %v3193_v24 = vcombine.low %v226_v11, %v230_v12 }
  0x67   :  { %2473 = vmatpush1.bf16.msra.mxu0 %v3129_v17  ;;  %2596 = vmatpush1.bf16.msra.mxu1 %v3131_v18  ;;  %v3194_v17 = vcombine.high %v226_v11, %v230_v12  ;;  %v3196_v18 = vcombine.high %v227_v13, %v231_v14  ;;  %v283_v11 = vld [vmem:[#allocation2 + $0x788] sm:$0xff]  ;;  %v3243_v14 = vcombine.low %v275_v2, %v279_v3 }
  0x68   :  { %2483 = vmatprep.subr.bf16.mxu0 %v3138_v19  ;;  %2606 = vmatprep.subr.bf16.mxu1 %v3140_v20  ;;  %v234_v19 = vld [vmem:[#allocation2 + $0x600] sm:$0xff]  ;;  %v287_v12 = vld [vmem:[#allocation2 + $0x7a8] sm:$0xff] }
  0x69   :  { %v238_v20 = vld [vmem:[#allocation2 + $0x620] sm:$0xff] }
  0x6a   :  { %2475 = vmatmul.mubr.bf16.vlgmr.msra.gmra.mrb[0].mxu0 %v3585_v23  ;;  %2598 = vmatmul.mubr.bf16.vlgmr.msra.gmra.mrb[0].mxu1 %v3585_v23  ;;  %v3201_v63 = vcombine.low %v234_v19, %v238_v20 }
  0x6b   :  { %2484 = vmatpush1.bf16.msra.mxu0 %v3137_v26  ;;  %2607 = vmatpush1.bf16.msra.mxu1 %v3139_v27  ;;  %v3202_v26 = vcombine.high %v234_v19, %v238_v20  ;;  %v3204_v27 = vcombine.high %v235_v21, %v239_v22  ;;  %v428_v19 = vcombine.high %v3570_v59, %v3570_v59  ;;  %v291_v20 = vld [vmem:[#allocation2 + $0x7c8] sm:$0xff] }
  0x6c   :  { %2485 = vmatprep.subr.bf16.mxu0 %v3146_v28  ;;  %2608 = vmatprep.subr.bf16.mxu1 %v3148_v29  ;;  %v242_v28 = vld [vmem:[#allocation2 + $0x640] sm:$0xff]  ;;  %v295_v21 = vld [vmem:[#allocation2 + $0x7e8] sm:$0xff] }
  0x6d   :  { %2515 = vmatprep.mubr.bf16.mxu0 %v3589_v32  ;;  %2638 = vmatprep.mubr.bf16.mxu1 %v3589_v32  ;;  %v246_v29 = vld [vmem:[#allocation2 + $0x660] sm:$0xff]  ;;  %v3259_v59 = vcombine.low %v291_v20, %v295_v21 }
  0x6e   :  { %v3209_v40 = vcombine.low %v242_v28, %v246_v29 }
  0x6f   :  { %2486 = vmatpush1.bf16.msra.mxu0 %v3145_v34  ;;  %2609 = vmatpush1.bf16.msra.mxu1 %v3147_v35  ;;  %v3210_v34 = vcombine.high %v242_v28, %v246_v29  ;;  %v3212_v35 = vcombine.high %v243_v30, %v247_v31  ;;  %v302_v28 = vld [vmem:[#allocation2 + $0x820] sm:$0xff]  ;;  %v3598_v29 = vrot.slane %v428_v19, %v3565_v53  ;;  %v299_v30 = vld [vmem:[#allocation2 + $0x808] sm:$0xff] }
  0x70   :  { %2487 = vmatprep.subr.bf16.mxu0 %v3154_v36  ;;  %2610 = vmatprep.subr.bf16.mxu1 %v3156_v37  ;;  %v250_v36 = vld [vmem:[#allocation2 + $0x680] sm:$0xff]  ;;  %v303_v31 = vld [vmem:[#allocation2 + $0x828] sm:$0xff] }
  0x71   :  { %v254_v37 = vld [vmem:[#allocation2 + $0x6a0] sm:$0xff] }
  0x72   :  { %v3217_v49 = vcombine.low %v250_v36, %v254_v37  ;;  %v346_v19 = vld [vmem:[#allocation2 + $0x980] sm:$0xff] }
  0x73   :  { %2488 = vmatpush1.bf16.msra.mxu0 %v3153_v42  ;;  %2611 = vmatpush1.bf16.msra.mxu1 %v3155_v43  ;;  %v3218_v42 = vcombine.high %v250_v36, %v254_v37  ;;  %v3220_v43 = vcombine.high %v251_v38, %v255_v39  ;;  %v310_v36 = vld [vmem:[#allocation2 + $0x860] sm:$0xff]  ;;  %v444_v37 = vcombine.high %v3598_v29, %v3598_v29  ;;  %v307_v39 = vld [vmem:[#allocation2 + $0x848] sm:$0xff] }
  0x74   :  { %2489 = vmatprep.subr.bf16.mxu0 %v3162_v45  ;;  %2612 = vmatprep.subr.bf16.mxu1 %v3164_v46  ;;  %v258_v45 = vld [vmem:[#allocation2 + $0x6c0] sm:$0xff]  ;;  %v3604_v38 = vcombine.high %v3585_v23, %v3585_v23 }
  0x75   :  { %v262_v46 = vld [vmem:[#allocation2 + $0x6e0] sm:$0xff] }
  0x76   :  { %v3225_v58 = vcombine.low %v258_v45, %v262_v46 }
  0x77   :  { %2490 = vmatpush1.bf16.msra.mxu0 %v3161_v51  ;;  %2613 = vmatpush1.bf16.msra.mxu1 %v3163_v52  ;;  %v3226_v51 = vcombine.high %v258_v45, %v262_v46  ;;  %v3228_v52 = vcombine.high %v259_v47, %v263_v48  ;;  %v314_v46 = vld [vmem:[#allocation2 + $0x880] sm:$0xff]  ;;  %v3607_v48 = vrot.slane %v444_v37, %v3565_v53 }
  0x78   :  { %2491 = vmatprep.subr.bf16.mxu0 %v3170_v54  ;;  %2614 = vmatprep.subr.bf16.mxu1 %v3172_v55  ;;  %v266_v54 = vld [vmem:[#allocation2 + $0x700] sm:$0xff] }
  0x79   :  { %v270_v55 = vld [vmem:[#allocation2 + $0x720] sm:$0xff] }
  0x7a   :  { %v3233_v4 = vcombine.low %v266_v54, %v270_v55  ;;  %v318_v47 = vld [vmem:[#allocation2 + $0x8a0] sm:$0xff] }
  0x7b   :  { %2492 = vmatpush1.bf16.msra.mxu0 %v3169_v61  ;;  %2615 = vmatpush1.bf16.msra.mxu1 %v3171_v62  ;;  %v3234_v61 = vcombine.high %v266_v54, %v270_v55  ;;  %v3236_v62 = vcombine.high %v267_v56, %v271_v57  ;;  %v3282_v54 = vcombine.high %v314_v46, %v318_v47  ;;  %v322_v56 = vld [vmem:[#allocation2 + $0x8c0] sm:$0xff] }
  0x7c   :  { %2493 = vmatprep.subr.bf16.mxu0 %v3178_v0  ;;  %2616 = vmatprep.subr.bf16.mxu1 %v3180_v1  ;;  %v274_v0 = vld [vmem:[#allocation2 + $0x740] sm:$0xff] }
  0x7d   :  { %v278_v1 = vld [vmem:[#allocation2 + $0x760] sm:$0xff] }
  0x7e   :  { %v3241_v13 = vcombine.low %v274_v0, %v278_v1  ;;  %v326_v57 = vld [vmem:[#allocation2 + $0x8e0] sm:$0xff] }
  0x7f   :  { %2494 = vmatpush1.bf16.msra.mxu0 %v3177_v6  ;;  %2617 = vmatpush1.bf16.msra.mxu1 %v3179_v7  ;;  %v3242_v6 = vcombine.high %v274_v0, %v278_v1  ;;  %v3244_v7 = vcombine.high %v275_v2, %v279_v3  ;;  %v3290_v0 = vcombine.high %v322_v56, %v326_v57  ;;  %v330_v2 = vld [vmem:[#allocation2 + $0x900] sm:$0xff] }
  0x80   :  { %2495 = vmatprep.subr.bf16.mxu0 %v3186_v8  ;;  %2618 = vmatprep.subr.bf16.mxu1 %v3188_v10  ;;  %v282_v8 = vld [vmem:[#allocation2 + $0x780] sm:$0xff] }
  0x81   :  { %v286_v10 = vld [vmem:[#allocation2 + $0x7a0] sm:$0xff] }
  0x82   :  { %v3249_v22 = vcombine.low %v282_v8, %v286_v10  ;;  %v334_v3 = vld [vmem:[#allocation2 + $0x920] sm:$0xff] }
  0x83   :  { %2496 = vmatpush1.bf16.msra.mxu0 %v3185_v15  ;;  %2619 = vmatpush1.bf16.msra.mxu1 %v3187_v16  ;;  %v3250_v15 = vcombine.high %v282_v8, %v286_v10  ;;  %v3252_v16 = vcombine.high %v283_v11, %v287_v12  ;;  %v3298_v8 = vcombine.high %v330_v2, %v334_v3  ;;  %v366_v37 = vld [vmem:[#allocation2 + $0xa20] sm:$0xff] }
  0x84   :  { %2497 = vmatprep.subr.bf16.mxu0 %v3194_v17  ;;  %2620 = vmatprep.subr.bf16.mxu1 %v3196_v18  ;;  %v290_v17 = vld [vmem:[#allocation2 + $0x7c0] sm:$0xff] }
  0x85   :  { %v294_v18 = vld [vmem:[#allocation2 + $0x7e0] sm:$0xff] }
  0x87   :  { %2498 = vmatpush1.bf16.msra.mxu0 %v3193_v24  ;;  %2621 = vmatpush1.bf16.msra.mxu1 %v3195_v25  ;;  %v3251_v24 = vcombine.low %v283_v11, %v287_v12  ;;  %v3258_v25 = vcombine.high %v290_v17, %v294_v18  ;;  %v338_v11 = vld [vmem:[#allocation2 + $0x940] sm:$0xff] }
  0x88   :  { %2499 = vmatprep.subr.bf16.mxu0 %v3202_v26  ;;  %2622 = vmatprep.subr.bf16.mxu1 %v3204_v27  ;;  %v3260_v26 = vcombine.high %v291_v20, %v295_v21  ;;  %v298_v27 = vld [vmem:[#allocation2 + $0x800] sm:$0xff]  ;;  %v347_v21 = vld [vmem:[#allocation2 + $0x988] sm:$0xff] }
  0x89   :  { %v342_v12 = vld [vmem:[#allocation2 + $0x960] sm:$0xff] }
  0x8a   :  { %v350_v20 = vld [vmem:[#allocation2 + $0x9a0] sm:$0xff] }
  0x8b   :  { %2500 = vmatpush1.bf16.msra.mxu0 %v3201_v63  ;;  %2623 = vmatpush1.bf16.msra.mxu1 %v3203_v33  ;;  %v3257_v63 = vcombine.low %v290_v17, %v294_v18  ;;  %v3266_v33 = vcombine.high %v298_v27, %v302_v28  ;;  %v3306_v17 = vcombine.high %v338_v11, %v342_v12 }
  0x8c   :  { %2501 = vmatprep.subr.bf16.mxu0 %v3210_v34  ;;  %2624 = vmatprep.subr.bf16.mxu1 %v3212_v35  ;;  %v3268_v34 = vcombine.high %v299_v30, %v303_v31  ;;  %v306_v35 = vld [vmem:[#allocation2 + $0x840] sm:$0xff] }
  0x8f   :  { %2502 = vmatpush1.bf16.msra.mxu0 %v3209_v40  ;;  %2625 = vmatpush1.bf16.msra.mxu1 %v3211_v41  ;;  %v311_v40 = vld [vmem:[#allocation2 + $0x868] sm:$0xff]  ;;  %v3265_v41 = vcombine.low %v298_v27, %v302_v28  ;;  %v354_v28 = vld [vmem:[#allocation2 + $0x9c0] sm:$0xff] }
  0x90   :  { %2503 = vmatprep.subr.bf16.mxu0 %v3218_v42  ;;  %2626 = vmatprep.subr.bf16.mxu1 %v3220_v43  ;;  %v3267_v42 = vcombine.low %v299_v30, %v303_v31  ;;  %v3274_v43 = vcombine.high %v306_v35, %v310_v36  ;;  %v3276_v45 = vcombine.high %v307_v39, %v311_v40  ;;  %v358_v30 = vld [vmem:[#allocation2 + $0x9e0] sm:$0xff]  ;;  %v355_v31 = vld [vmem:[#allocation2 + $0x9c8] sm:$0xff] }
  0x93   :  { %2504 = vmatpush1.bf16.msra.mxu0 %v3217_v49  ;;  %2627 = vmatpush1.bf16.msra.mxu1 %v3219_v50  ;;  %v315_v49 = vld [vmem:[#allocation2 + $0x888] sm:$0xff] }
  0x94   :  { %2505 = vmatprep.subr.bf16.mxu0 %v3226_v51  ;;  %2628 = vmatprep.subr.bf16.mxu1 %v3228_v52  ;;  %v319_v50 = vld [vmem:[#allocation2 + $0x8a8] sm:$0xff]  ;;  %v3273_v51 = vcombine.low %v306_v35, %v310_v36  ;;  %v3275_v52 = vcombine.low %v307_v39, %v311_v40  ;;  %v362_v36 = vld [vmem:[#allocation2 + $0xa00] sm:$0xff] }
  0x95   :  { %v3284_v55 = vcombine.high %v315_v49, %v319_v50  ;;  %v363_v39 = vld [vmem:[#allocation2 + $0xa08] sm:$0xff] }
  0x96   :  { %v367_v40 = vld [vmem:[#allocation2 + $0xa28] sm:$0xff] }
  0x97   :  { %2506 = vmatpush1.bf16.msra.mxu0 %v3225_v58  ;;  %2629 = vmatpush1.bf16.msra.mxu1 %v3227_v60  ;;  %v323_v58 = vld [vmem:[#allocation2 + $0x8c8] sm:$0xff] }
  0x98   :  { %2507 = vmatprep.subr.bf16.mxu0 %v3234_v61  ;;  %2630 = vmatprep.subr.bf16.mxu1 %v3236_v62  ;;  %v327_v60 = vld [vmem:[#allocation2 + $0x8e8] sm:$0xff]  ;;  %v3281_v61 = vcombine.low %v314_v46, %v318_v47  ;;  %v3283_v62 = vcombine.low %v315_v49, %v319_v50  ;;  %v370_v46 = vld [vmem:[#allocation2 + $0xa40] sm:$0xff] }
  0x99   :  { %v3292_v1 = vcombine.high %v323_v58, %v327_v60  ;;  %v374_v47 = vld [vmem:[#allocation2 + $0xa60] sm:$0xff]  ;;  %v371_v49 = vld [vmem:[#allocation2 + $0xa48] sm:$0xff] }
  0x9a   :  { %v375_v50 = vld [vmem:[#allocation2 + $0xa68] sm:$0xff] }
  0x9b   :  { %2508 = vmatpush1.bf16.msra.mxu0 %v3233_v4  ;;  %2631 = vmatpush1.bf16.msra.mxu1 %v3235_v5  ;;  %v331_v4 = vld [vmem:[#allocation2 + $0x908] sm:$0xff] }
  0x9c   :  { %2509 = vmatprep.subr.bf16.mxu0 %v3242_v6  ;;  %2632 = vmatprep.subr.bf16.mxu1 %v3244_v7  ;;  %v335_v5 = vld [vmem:[#allocation2 + $0x928] sm:$0xff]  ;;  %v3289_v6 = vcombine.low %v322_v56, %v326_v57  ;;  %v3291_v7 = vcombine.low %v323_v58, %v327_v60  ;;  %v378_v56 = vld [vmem:[#allocation2 + $0xa80] sm:$0xff] }
  0x9d   :  { %v3300_v10 = vcombine.high %v331_v4, %v335_v5  ;;  %v382_v57 = vld [vmem:[#allocation2 + $0xaa0] sm:$0xff]  ;;  %v379_v58 = vld [vmem:[#allocation2 + $0xa88] sm:$0xff] }
  0x9e   :  { %v383_v60 = vld [vmem:[#allocation2 + $0xaa8] sm:$0xff] }
  0x9f   :  { %2510 = vmatpush1.bf16.msra.mxu0 %v3241_v13  ;;  %2633 = vmatpush1.bf16.msra.mxu1 %v3243_v14  ;;  %v339_v13 = vld [vmem:[#allocation2 + $0x948] sm:$0xff] }
  0xa0   :  { %2511 = vmatprep.subr.bf16.mxu0 %v3250_v15  ;;  %2634 = vmatprep.subr.bf16.mxu1 %v3252_v16  ;;  %v343_v14 = vld [vmem:[#allocation2 + $0x968] sm:$0xff]  ;;  %v3297_v15 = vcombine.low %v330_v2, %v334_v3  ;;  %v3299_v16 = vcombine.low %v331_v4, %v335_v5  ;;  %v386_v2 = vld [vmem:[#allocation2 + $0xac0] sm:$0xff] }
  0xa1   :  { %v3308_v18 = vcombine.high %v339_v13, %v343_v14  ;;  %v390_v3 = vld [vmem:[#allocation2 + $0xae0] sm:$0xff]  ;;  %v387_v4 = vld [vmem:[#allocation2 + $0xac8] sm:$0xff] }
  0xa2   :  { %v391_v5 = vld [vmem:[#allocation2 + $0xae8] sm:$0xff] }
  0xa3   :  { %2512 = vmatpush1.bf16.msra.mxu0 %v3249_v22  ;;  %2635 = vmatpush1.bf16.msra.mxu1 %v3251_v24  ;;  %v351_v22 = vld [vmem:[#allocation2 + $0x9a8] sm:$0xff]  ;;  %v3305_v24 = vcombine.low %v338_v11, %v342_v12  ;;  %v394_v11 = vld [vmem:[#allocation2 + $0xb00] sm:$0xff] }
  0xa4   :  { %2513 = vmatprep.subr.bf16.mxu0 %v3258_v25  ;;  %2636 = vmatprep.subr.bf16.mxu1 %v3260_v26  ;;  %v3307_v25 = vcombine.low %v339_v13, %v343_v14  ;;  %v3314_v26 = vcombine.high %v346_v19, %v350_v20  ;;  %v3316_v27 = vcombine.high %v347_v21, %v351_v22  ;;  %v398_v12 = vld [vmem:[#allocation2 + $0xb20] sm:$0xff]  ;;  %v395_v13 = vld [vmem:[#allocation2 + $0xb08] sm:$0xff] }
  0xa5   :  { %v399_v14 = vld [vmem:[#allocation2 + $0xb28] sm:$0xff] }
  0xa7   :  { %2514 = vmatpush1.bf16.msra.mxu0 %v3257_v63  ;;  %2637 = vmatpush1.bf16.msra.mxu1 %v3259_v59  ;;  %v359_v63 = vld [vmem:[#allocation2 + $0x9e8] sm:$0xff]  ;;  %v3313_v59 = vcombine.low %v346_v19, %v350_v20  ;;  %v402_v19 = vld [vmem:[#allocation2 + $0xb40] sm:$0xff] }
  0xa8   :  { %2524 = vmatprep.subr.bf16.mxu0 %v3266_v33  ;;  %2647 = vmatprep.subr.bf16.mxu1 %v3268_v34  ;;  %v3315_v33 = vcombine.low %v347_v21, %v351_v22  ;;  %v3322_v34 = vcombine.high %v354_v28, %v358_v30  ;;  %v3324_v35 = vcombine.high %v355_v31, %v359_v63  ;;  %v406_v20 = vld [vmem:[#allocation2 + $0xb60] sm:$0xff]  ;;  %v403_v21 = vld [vmem:[#allocation2 + $0xb48] sm:$0xff] }
  0xa9   :  { %v407_v22 = vld [vmem:[#allocation2 + $0xb68] sm:$0xff] }
  0xaa   :  { %2516 = vmatmul.mubr.bf16.vlgmr.msra.gmra.mrb[0].mxu0 %v3604_v38  ;;  %2639 = vmatmul.mubr.bf16.vlgmr.msra.gmra.mrb[0].mxu1 %v3604_v38 }
  0xab   :  { %2525 = vmatpush1.bf16.msra.mxu0 %v3265_v41  ;;  %2648 = vmatpush1.bf16.msra.mxu1 %v3267_v42  ;;  %v3321_v41 = vcombine.low %v354_v28, %v358_v30  ;;  %v3323_v42 = vcombine.low %v355_v31, %v359_v63  ;;  %v410_v28 = vld [vmem:[#allocation2 + $0xb80] sm:$0xff]  ;;  %v411_v31 = vld [vmem:[#allocation2 + $0xb88] sm:$0xff] }
  0xac   :  { %2526 = vmatprep.subr.bf16.mxu0 %v3274_v43  ;;  %2649 = vmatprep.subr.bf16.mxu1 %v3276_v45  ;;  %v3330_v43 = vcombine.high %v362_v36, %v366_v37  ;;  %v3332_v45 = vcombine.high %v363_v39, %v367_v40  ;;  %v414_v30 = vld [vmem:[#allocation2 + $0xba0] sm:$0xff]  ;;  %v415_v63 = vld [vmem:[#allocation2 + $0xba8] sm:$0xff] }
  0xad   :  { %2556 = vmatprep.mubr.bf16.mxu0 %v3607_v48  ;;  %2679 = vmatprep.mubr.bf16.mxu1 %v3607_v48 }
  0xaf   :  { %2527 = vmatpush1.bf16.msra.mxu0 %v3273_v51  ;;  %2650 = vmatpush1.bf16.msra.mxu1 %v3275_v52  ;;  %v3329_v51 = vcombine.low %v362_v36, %v366_v37  ;;  %v3331_v52 = vcombine.low %v363_v39, %v367_v40  ;;  %v418_v36 = vld [vmem:[#allocation2 + $0xbc0] sm:$0xff]  ;;  %v419_v39 = vld [vmem:[#allocation2 + $0xbc8] sm:$0xff] }
  0xb0   :  { %2528 = vmatprep.subr.bf16.mxu0 %v3282_v54  ;;  %2651 = vmatprep.subr.bf16.mxu1 %v3284_v55  ;;  %v3338_v54 = vcombine.high %v370_v46, %v374_v47  ;;  %v3340_v55 = vcombine.high %v371_v49, %v375_v50  ;;  %v422_v37 = vld [vmem:[#allocation2 + $0xbe0] sm:$0xff]  ;;  %v423_v40 = vld [vmem:[#allocation2 + $0xbe8] sm:$0xff] }
  0xb3   :  { %2529 = vmatpush1.bf16.msra.mxu0 %v3281_v61  ;;  %2652 = vmatpush1.bf16.msra.mxu1 %v3283_v62  ;;  %v3337_v61 = vcombine.low %v370_v46, %v374_v47  ;;  %v3339_v62 = vcombine.low %v371_v49, %v375_v50  ;;  %v44_v46 = vld [vmem:[#allocation2 + $0x10] sm:$0xff]  ;;  %v45_v49 = vld [vmem:[#allocation2 + $0x18] sm:$0xff] }
  0xb4   :  { %2530 = vmatprep.subr.bf16.mxu0 %v3290_v0  ;;  %2653 = vmatprep.subr.bf16.mxu1 %v3292_v1  ;;  %v3346_v0 = vcombine.high %v378_v56, %v382_v57  ;;  %v3348_v1 = vcombine.high %v379_v58, %v383_v60  ;;  %v48_v47 = vld [vmem:[#allocation2 + $0x30] sm:$0xff]  ;;  %v49_v50 = vld [vmem:[#allocation2 + $0x38] sm:$0xff] }
  0xb7   :  { %2531 = vmatpush1.bf16.msra.mxu0 %v3289_v6  ;;  %2654 = vmatpush1.bf16.msra.mxu1 %v3291_v7  ;;  %v3345_v6 = vcombine.low %v378_v56, %v382_v57  ;;  %v3347_v7 = vcombine.low %v379_v58, %v383_v60  ;;  %v52_v56 = vld [vmem:[#allocation2 + $0x50] sm:$0xff]  ;;  %v3615_v58 = vrot.slane %v3598_v29, %v3565_v53  ;;  %v53_v60 = vld [vmem:[#allocation2 + $0x58] sm:$0xff] }
  0xb8   :  { %2532 = vmatprep.subr.bf16.mxu0 %v3298_v8  ;;  %2655 = vmatprep.subr.bf16.mxu1 %v3300_v10  ;;  %v3354_v8 = vcombine.high %v386_v2, %v390_v3  ;;  %v3356_v10 = vcombine.high %v387_v4, %v391_v5  ;;  %v56_v57 = vld [vmem:[#allocation2 + $0x70] sm:$0xff] }
  0xb9   :  { %v3021_v29 = vcombine.low %v52_v56, %v56_v57 }
  0xbb   :  { %2533 = vmatpush1.bf16.msra.mxu0 %v3297_v15  ;;  %2656 = vmatpush1.bf16.msra.mxu1 %v3299_v16  ;;  %v3353_v15 = vcombine.low %v386_v2, %v390_v3  ;;  %v3355_v16 = vcombine.low %v387_v4, %v391_v5  ;;  %v60_v3 = vld [vmem:[#allocation2 + $0x90] sm:$0xff]  ;;  %v61_v5 = vld [vmem:[#allocation2 + $0x98] sm:$0xff] }
  0xbc   :  { %2534 = vmatprep.subr.bf16.mxu0 %v3306_v17  ;;  %2657 = vmatprep.subr.bf16.mxu1 %v3308_v18  ;;  %v3362_v17 = vcombine.high %v394_v11, %v398_v12  ;;  %v3364_v18 = vcombine.high %v395_v13, %v399_v14  ;;  %v64_v4 = vld [vmem:[#allocation2 + $0xb0] sm:$0xff] }
  0xbf   :  { %2535 = vmatpush1.bf16.msra.mxu0 %v3305_v24  ;;  %2658 = vmatpush1.bf16.msra.mxu1 %v3307_v25  ;;  %v3361_v24 = vcombine.low %v394_v11, %v398_v12  ;;  %v3363_v25 = vcombine.low %v395_v13, %v399_v14  ;;  %v68_v11 = vld [vmem:[#allocation2 + $0xd0] sm:$0xff]  ;;  %v69_v13 = vld [vmem:[#allocation2 + $0xd8] sm:$0xff] }
  0xc0   :  { %2536 = vmatprep.subr.bf16.mxu0 %v3314_v26  ;;  %2659 = vmatprep.subr.bf16.mxu1 %v3316_v27  ;;  %v3370_v26 = vcombine.high %v402_v19, %v406_v20  ;;  %v3372_v27 = vcombine.high %v403_v21, %v407_v22  ;;  %v72_v12 = vld [vmem:[#allocation2 + $0xf0] sm:$0xff]  ;;  %v73_v14 = vld [vmem:[#allocation2 + $0xf8] sm:$0xff] }
  0xc3   :  { %2537 = vmatpush1.bf16.msra.mxu0 %v3313_v59  ;;  %2660 = vmatpush1.bf16.msra.mxu1 %v3315_v33  ;;  %v3369_v59 = vcombine.low %v402_v19, %v406_v20  ;;  %v3371_v33 = vcombine.low %v403_v21, %v407_v22  ;;  %v76_v19 = vld [vmem:[#allocation2 + $0x110] sm:$0xff]  ;;  %v77_v21 = vld [vmem:[#allocation2 + $0x118] sm:$0xff] }
  0xc4   :  { %2538 = vmatprep.subr.bf16.mxu0 %v3322_v34  ;;  %2661 = vmatprep.subr.bf16.mxu1 %v3324_v35  ;;  %v3378_v34 = vcombine.high %v410_v28, %v414_v30  ;;  %v3380_v35 = vcombine.high %v411_v31, %v415_v63  ;;  %v80_v20 = vld [vmem:[#allocation2 + $0x130] sm:$0xff]  ;;  %v81_v22 = vld [vmem:[#allocation2 + $0x138] sm:$0xff] }
  0xc7   :  { %2539 = vmatpush1.bf16.msra.mxu0 %v3321_v41  ;;  %2662 = vmatpush1.bf16.msra.mxu1 %v3323_v42  ;;  %v3377_v41 = vcombine.low %v410_v28, %v414_v30  ;;  %v3379_v42 = vcombine.low %v411_v31, %v415_v63  ;;  %v88_v28 = vld [vmem:[#allocation2 + $0x170] sm:$0xff]  ;;  %v85_v30 = vld [vmem:[#allocation2 + $0x158] sm:$0xff]  ;;  %v3045_v63 = vcombine.low %v76_v19, %v80_v20 }
  0xc8   :  { %2540 = vmatprep.subr.bf16.mxu0 %v3330_v43  ;;  %2663 = vmatprep.subr.bf16.mxu1 %v3332_v45  ;;  %v3386_v43 = vcombine.high %v418_v36, %v422_v37  ;;  %v3388_v45 = vcombine.high %v419_v39, %v423_v40  ;;  %v89_v31 = vld [vmem:[#allocation2 + $0x178] sm:$0xff] }
  0xcb   :  { %2541 = vmatpush1.bf16.msra.mxu0 %v3329_v51  ;;  %2664 = vmatpush1.bf16.msra.mxu1 %v3331_v52  ;;  %v3385_v51 = vcombine.low %v418_v36, %v422_v37  ;;  %v3387_v52 = vcombine.low %v419_v39, %v423_v40  ;;  %v96_v36 = vld [vmem:[#allocation2 + $0x1b0] sm:$0xff]  ;;  %v93_v37 = vld [vmem:[#allocation2 + $0x198] sm:$0xff] }
  0xcc   :  { %2542 = vmatprep.subr.bf16.mxu0 %v3338_v54  ;;  %2665 = vmatprep.subr.bf16.mxu1 %v3340_v55  ;;  %v3014_v54 = vcombine.high %v44_v46, %v48_v47  ;;  %v3016_v55 = vcombine.high %v45_v49, %v49_v50  ;;  %v97_v39 = vld [vmem:[#allocation2 + $0x1b8] sm:$0xff] }
  0xcf   :  { %2543 = vmatpush1.bf16.msra.mxu0 %v3337_v61  ;;  %2666 = vmatpush1.bf16.msra.mxu1 %v3339_v62  ;;  %v57_v61 = vld [vmem:[#allocation2 + $0x78] sm:$0xff]  ;;  %v3013_v62 = vcombine.low %v44_v46, %v48_v47  ;;  %v104_v46 = vld [vmem:[#allocation2 + $0x1f0] sm:$0xff] }
  0xd0   :  { %2544 = vmatprep.subr.bf16.mxu0 %v3346_v0  ;;  %2667 = vmatprep.subr.bf16.mxu1 %v3348_v1  ;;  %v3015_v0 = vcombine.low %v45_v49, %v49_v50  ;;  %v3022_v1 = vcombine.high %v52_v56, %v56_v57  ;;  %v3024_v2 = vcombine.high %v53_v60, %v57_v61  ;;  %v101_v47 = vld [vmem:[#allocation2 + $0x1d8] sm:$0xff]  ;;  %v112_v56 = vld [vmem:[#allocation2 + $0x230] sm:$0xff] }
  0xd1   :  { %v105_v49 = vld [vmem:[#allocation2 + $0x1f8] sm:$0xff] }
  0xd2   :  { %v109_v57 = vld [vmem:[#allocation2 + $0x218] sm:$0xff] }
  0xd3   :  { %2545 = vmatpush1.bf16.msra.mxu0 %v3345_v6  ;;  %2668 = vmatpush1.bf16.msra.mxu1 %v3347_v7  ;;  %v65_v6 = vld [vmem:[#allocation2 + $0xb8] sm:$0xff]  ;;  %v3023_v7 = vcombine.low %v53_v60, %v57_v61 }
  0xd4   :  { %2546 = vmatprep.subr.bf16.mxu0 %v3354_v8  ;;  %2669 = vmatprep.subr.bf16.mxu1 %v3356_v10  ;;  %v3030_v8 = vcombine.high %v60_v3, %v64_v4  ;;  %v3032_v10 = vcombine.high %v61_v5, %v65_v6  ;;  %v113_v60 = vld [vmem:[#allocation2 + $0x238] sm:$0xff] }
  0xd7   :  { %2547 = vmatpush1.bf16.msra.mxu0 %v3353_v15  ;;  %2670 = vmatpush1.bf16.msra.mxu1 %v3355_v16  ;;  %v3029_v15 = vcombine.low %v60_v3, %v64_v4  ;;  %v3031_v16 = vcombine.low %v61_v5, %v65_v6  ;;  %v120_v3 = vld [vmem:[#allocation2 + $0x270] sm:$0xff]  ;;  %v117_v4 = vld [vmem:[#allocation2 + $0x258] sm:$0xff] }
  0xd8   :  { %2548 = vmatprep.subr.bf16.mxu0 %v3362_v17  ;;  %2671 = vmatprep.subr.bf16.mxu1 %v3364_v18  ;;  %v3038_v17 = vcombine.high %v68_v11, %v72_v12  ;;  %v3040_v18 = vcombine.high %v69_v13, %v73_v14  ;;  %v121_v5 = vld [vmem:[#allocation2 + $0x278] sm:$0xff] }
  0xdb   :  { %2549 = vmatpush1.bf16.msra.mxu0 %v3361_v24  ;;  %2672 = vmatpush1.bf16.msra.mxu1 %v3363_v25  ;;  %v3037_v24 = vcombine.low %v68_v11, %v72_v12  ;;  %v3039_v25 = vcombine.low %v69_v13, %v73_v14  ;;  %v128_v11 = vld [vmem:[#allocation2 + $0x2b0] sm:$0xff]  ;;  %v125_v12 = vld [vmem:[#allocation2 + $0x298] sm:$0xff] }
  0xdc   :  { %2550 = vmatprep.subr.bf16.mxu0 %v3370_v26  ;;  %2673 = vmatprep.subr.bf16.mxu1 %v3372_v27  ;;  %v3046_v26 = vcombine.high %v76_v19, %v80_v20  ;;  %v84_v27 = vld [vmem:[#allocation2 + $0x150] sm:$0xff]  ;;  %v129_v13 = vld [vmem:[#allocation2 + $0x2b8] sm:$0xff] }
  0xdd   :  { %v3053_v40 = vcombine.low %v84_v27, %v88_v28  ;;  %v136_v19 = vld [vmem:[#allocation2 + $0x2f0] sm:$0xff]  ;;  %v133_v20 = vld [vmem:[#allocation2 + $0x2d8] sm:$0xff] }
  0xdf   :  { %2551 = vmatpush1.bf16.msra.mxu0 %v3369_v59  ;;  %2674 = vmatpush1.bf16.msra.mxu1 %v3371_v33  ;;  %v3047_v59 = vcombine.low %v77_v21, %v81_v22  ;;  %v3054_v33 = vcombine.high %v84_v27, %v88_v28  ;;  %v144_v27 = vld [vmem:[#allocation2 + $0x330] sm:$0xff]  ;;  %v141_v28 = vld [vmem:[#allocation2 + $0x318] sm:$0xff] }
  0xe0   :  { %2552 = vmatprep.subr.bf16.mxu0 %v3378_v34  ;;  %2675 = vmatprep.subr.bf16.mxu1 %v3380_v35  ;;  %v3056_v34 = vcombine.high %v85_v30, %v89_v31  ;;  %v92_v35 = vld [vmem:[#allocation2 + $0x190] sm:$0xff] }
  0xe1   :  { %v3061_v50 = vcombine.low %v92_v35, %v96_v36 }
  0xe3   :  { %2553 = vmatpush1.bf16.msra.mxu0 %v3377_v41  ;;  %2676 = vmatpush1.bf16.msra.mxu1 %v3379_v42  ;;  %v3055_v41 = vcombine.low %v85_v30, %v89_v31  ;;  %v3062_v42 = vcombine.high %v92_v35, %v96_v36  ;;  %v145_v30 = vld [vmem:[#allocation2 + $0x338] sm:$0xff]  ;;  %v152_v35 = vld [vmem:[#allocation2 + $0x370] sm:$0xff] }
  0xe4   :  { %2554 = vmatprep.subr.bf16.mxu0 %v3386_v43  ;;  %2677 = vmatprep.subr.bf16.mxu1 %v3388_v45  ;;  %v3064_v43 = vcombine.high %v93_v37, %v97_v39  ;;  %v100_v45 = vld [vmem:[#allocation2 + $0x1d0] sm:$0xff]  ;;  %v149_v36 = vld [vmem:[#allocation2 + $0x358] sm:$0xff] }
  0xe5   :  { %v3069_v61 = vcombine.low %v100_v45, %v104_v46 }
  0xe7   :  { %2555 = vmatpush1.bf16.msra.mxu0 %v3385_v51  ;;  %2678 = vmatpush1.bf16.msra.mxu1 %v3387_v52  ;;  %v3063_v51 = vcombine.low %v93_v37, %v97_v39  ;;  %v3070_v52 = vcombine.high %v100_v45, %v104_v46  ;;  %v153_v37 = vld [vmem:[#allocation2 + $0x378] sm:$0xff]  ;;  %v160_v45 = vld [vmem:[#allocation2 + $0x3b0] sm:$0xff] }
  0xe8   :  { %2688 = vmatprep.subr.bf16.mxu0 %v3014_v54  ;;  %2811 = vmatprep.subr.bf16.mxu1 %v3016_v55  ;;  %v3072_v54 = vcombine.high %v101_v47, %v105_v49  ;;  %v108_v55 = vld [vmem:[#allocation2 + $0x210] sm:$0xff]  ;;  %v157_v46 = vld [vmem:[#allocation2 + $0x398] sm:$0xff] }
  0xe9   :  { %v3077_v6 = vcombine.low %v108_v55, %v112_v56 }
  0xea   :  { %2557 = vmatmul.mubr.bf16.vlgmr.msra.gmra.mrb[0].mxu0 %v3615_v58  ;;  %2680 = vmatmul.mubr.bf16.vlgmr.msra.gmra.mrb[0].mxu1 %v3615_v58 }
  0xeb   :  { %2689 = vmatpush1.bf16.msra.mxu0 %v3013_v62  ;;  %2812 = vmatpush1.bf16.msra.mxu1 %v3015_v0  ;;  %v3071_v62 = vcombine.low %v101_v47, %v105_v49  ;;  %v3078_v0 = vcombine.high %v108_v55, %v112_v56  ;;  %v161_v47 = vld [vmem:[#allocation2 + $0x3b8] sm:$0xff]  ;;  %v168_v55 = vld [vmem:[#allocation2 + $0x3f0] sm:$0xff] }
  0xec   :  { %2690 = vmatprep.subr.bf16.mxu0 %v3022_v1  ;;  %2813 = vmatprep.subr.bf16.mxu1 %v3024_v2  ;;  %v3080_v1 = vcombine.high %v109_v57, %v113_v60  ;;  %v116_v2 = vld [vmem:[#allocation2 + $0x250] sm:$0xff]  ;;  %v165_v56 = vld [vmem:[#allocation2 + $0x3d8] sm:$0xff] }
  0xed   :  { %2720 = vmatprep.mubr.bf16.mxu0 %v3579_v9  ;;  %2843 = vmatprep.mubr.bf16.mxu1 %v3579_v9  ;;  %v3048_v9 = vcombine.high %v77_v21, %v81_v22  ;;  %v3085_v14 = vcombine.low %v116_v2, %v120_v3  ;;  %v137_v21 = vld [vmem:[#allocation2 + $0x2f8] sm:$0xff] }
  0xef   :  { %2691 = vmatpush1.bf16.msra.mxu0 %v3021_v29  ;;  %2814 = vmatpush1.bf16.msra.mxu1 %v3023_v7  ;;  %v3079_v29 = vcombine.low %v109_v57, %v113_v60  ;;  %v3086_v7 = vcombine.high %v116_v2, %v120_v3  ;;  %v169_v57 = vld [vmem:[#allocation2 + $0x3f8] sm:$0xff]  ;;  %v176_v2 = vld [vmem:[#allocation2 + $0x430] sm:$0xff] }
  0xf0   :  { %2692 = vmatprep.subr.bf16.mxu0 %v3030_v8  ;;  %2815 = vmatprep.subr.bf16.mxu1 %v3032_v10  ;;  %v3088_v8 = vcombine.high %v117_v4, %v121_v5  ;;  %v124_v10 = vld [vmem:[#allocation2 + $0x290] sm:$0xff]  ;;  %v173_v3 = vld [vmem:[#allocation2 + $0x418] sm:$0xff] }
  0xf1   :  { %v3093_v22 = vcombine.low %v124_v10, %v128_v11 }
  0xf3   :  { %2693 = vmatpush1.bf16.msra.mxu0 %v3029_v15  ;;  %2816 = vmatpush1.bf16.msra.mxu1 %v3031_v16  ;;  %v3087_v15 = vcombine.low %v117_v4, %v121_v5  ;;  %v3094_v16 = vcombine.high %v124_v10, %v128_v11  ;;  %v177_v4 = vld [vmem:[#allocation2 + $0x438] sm:$0xff]  ;;  %v184_v10 = vld [vmem:[#allocation2 + $0x470] sm:$0xff] }
  0xf4   :  { %2694 = vmatprep.subr.bf16.mxu0 %v3038_v17  ;;  %2817 = vmatprep.subr.bf16.mxu1 %v3040_v18  ;;  %v3096_v17 = vcombine.high %v125_v12, %v129_v13  ;;  %v132_v18 = vld [vmem:[#allocation2 + $0x2d0] sm:$0xff]  ;;  %v181_v11 = vld [vmem:[#allocation2 + $0x458] sm:$0xff] }
  0xf5   :  { %v3101_v31 = vcombine.low %v132_v18, %v136_v19 }
  0xf7   :  { %2695 = vmatpush1.bf16.msra.mxu0 %v3037_v24  ;;  %2818 = vmatpush1.bf16.msra.mxu1 %v3039_v25  ;;  %v3095_v24 = vcombine.low %v125_v12, %v129_v13  ;;  %v3102_v25 = vcombine.high %v132_v18, %v136_v19  ;;  %v185_v12 = vld [vmem:[#allocation2 + $0x478] sm:$0xff]  ;;  %v192_v18 = vld [vmem:[#allocation2 + $0x4b0] sm:$0xff] }
  0xf8   :  { %2696 = vmatprep.subr.bf16.mxu0 %v3046_v26  ;;  %2819 = vmatprep.subr.bf16.mxu1 %v3048_v9  ;;  %v3104_v26 = vcombine.high %v133_v20, %v137_v21  ;;  %v140_v9 = vld [vmem:[#allocation2 + $0x310] sm:$0xff]  ;;  %v189_v19 = vld [vmem:[#allocation2 + $0x498] sm:$0xff] }
  0xf9   :  { %v3109_v39 = vcombine.low %v140_v9, %v144_v27 }
  0xfb   :  { %2697 = vmatpush1.bf16.msra.mxu0 %v3045_v63  ;;  %2820 = vmatpush1.bf16.msra.mxu1 %v3047_v59  ;;  %v3103_v63 = vcombine.low %v133_v20, %v137_v21  ;;  %v3110_v59 = vcombine.high %v140_v9, %v144_v27  ;;  %v193_v20 = vld [vmem:[#allocation2 + $0x4b8] sm:$0xff]  ;;  %v200_v9 = vld [vmem:[#allocation2 + $0x4f0] sm:$0xff] }
  0xfc   :  { %2698 = vmatprep.subr.bf16.mxu0 %v3054_v33  ;;  %2821 = vmatprep.subr.bf16.mxu1 %v3056_v34  ;;  %v3112_v33 = vcombine.high %v141_v28, %v145_v30  ;;  %v148_v34 = vld [vmem:[#allocation2 + $0x350] sm:$0xff]  ;;  %v197_v27 = vld [vmem:[#allocation2 + $0x4d8] sm:$0xff] }
  0xfd   :  { %v3117_v49 = vcombine.low %v148_v34, %v152_v35 }
  0xff   :  { %2699 = vmatpush1.bf16.msra.mxu0 %v3053_v40  ;;  %2822 = vmatpush1.bf16.msra.mxu1 %v3055_v41  ;;  %v3111_v40 = vcombine.low %v141_v28, %v145_v30  ;;  %v3118_v41 = vcombine.high %v148_v34, %v152_v35  ;;  %v201_v28 = vld [vmem:[#allocation2 + $0x4f8] sm:$0xff] }
 0x100   :  { %2700 = vmatprep.subr.bf16.mxu0 %v3062_v42  ;;  %2823 = vmatprep.subr.bf16.mxu1 %v3064_v43  ;;  %v3120_v42 = vcombine.high %v149_v36, %v153_v37  ;;  %v156_v43 = vld [vmem:[#allocation2 + $0x390] sm:$0xff]  ;;  %v205_v34 = vld [vmem:[#allocation2 + $0x518] sm:$0xff] }
 0x101   :  { %v3125_v60 = vcombine.low %v156_v43, %v160_v45  ;;  %v209_v35 = vld [vmem:[#allocation2 + $0x538] sm:$0xff] }
 0x103   :  { %2701 = vmatpush1.bf16.msra.mxu0 %v3061_v50  ;;  %2824 = vmatpush1.bf16.msra.mxu1 %v3063_v51  ;;  %v3119_v50 = vcombine.low %v149_v36, %v153_v37  ;;  %v3126_v51 = vcombine.high %v156_v43, %v160_v45  ;;  %v3167_v37 = vcombine.low %v197_v27, %v201_v28  ;;  %v217_v43 = vld [vmem:[#allocation2 + $0x578] sm:$0xff] }
 0x104   :  { %2702 = vmatprep.subr.bf16.mxu0 %v3070_v52  ;;  %2825 = vmatprep.subr.bf16.mxu1 %v3072_v54  ;;  %v3128_v52 = vcombine.high %v157_v46, %v161_v47  ;;  %v164_v54 = vld [vmem:[#allocation2 + $0x3d0] sm:$0xff] }
 0x105   :  { %v3133_v5 = vcombine.low %v164_v54, %v168_v55 }
 0x107   :  { %2703 = vmatpush1.bf16.msra.mxu0 %v3069_v61  ;;  %2826 = vmatpush1.bf16.msra.mxu1 %v3071_v62  ;;  %v3127_v61 = vcombine.low %v157_v46, %v161_v47  ;;  %v3134_v62 = vcombine.high %v164_v54, %v168_v55  ;;  %v3175_v46 = vcombine.low %v205_v34, %v209_v35  ;;  %v225_v54 = vld [vmem:[#allocation2 + $0x5b8] sm:$0xff] }
 0x108   :  { %2704 = vmatprep.subr.bf16.mxu0 %v3078_v0  ;;  %2827 = vmatprep.subr.bf16.mxu1 %v3080_v1  ;;  %v3136_v0 = vcombine.high %v165_v56, %v169_v57  ;;  %v172_v1 = vld [vmem:[#allocation2 + $0x410] sm:$0xff] }
 0x109   :  { %v3141_v13 = vcombine.low %v172_v1, %v176_v2 }
 0x10b   :  { %2705 = vmatpush1.bf16.msra.mxu0 %v3077_v6  ;;  %2828 = vmatpush1.bf16.msra.mxu1 %v3079_v29  ;;  %v3135_v6 = vcombine.low %v165_v56, %v169_v57  ;;  %v3142_v29 = vcombine.high %v172_v1, %v176_v2  ;;  %v233_v1 = vld [vmem:[#allocation2 + $0x5f8] sm:$0xff] }
 0x10c   :  { %2706 = vmatprep.subr.bf16.mxu0 %v3086_v7  ;;  %2829 = vmatprep.subr.bf16.mxu1 %v3088_v8  ;;  %v3144_v7 = vcombine.high %v173_v3, %v177_v4  ;;  %v180_v8 = vld [vmem:[#allocation2 + $0x450] sm:$0xff] }
 0x10d   :  { %v3149_v21 = vcombine.low %v180_v8, %v184_v10 }
 0x10f   :  { %2707 = vmatpush1.bf16.msra.mxu0 %v3085_v14  ;;  %2830 = vmatpush1.bf16.msra.mxu1 %v3087_v15  ;;  %v3143_v14 = vcombine.low %v173_v3, %v177_v4  ;;  %v3150_v15 = vcombine.high %v180_v8, %v184_v10  ;;  %v241_v8 = vld [vmem:[#allocation2 + $0x638] sm:$0xff] }
 0x110   :  { %2708 = vmatprep.subr.bf16.mxu0 %v3094_v16  ;;  %2831 = vmatprep.subr.bf16.mxu1 %v3096_v17  ;;  %v3152_v16 = vcombine.high %v181_v11, %v185_v12  ;;  %v188_v17 = vld [vmem:[#allocation2 + $0x490] sm:$0xff] }
 0x111   :  { %v3157_v30 = vcombine.low %v188_v17, %v192_v18 }
 0x113   :  { %2709 = vmatpush1.bf16.msra.mxu0 %v3093_v22  ;;  %2832 = vmatpush1.bf16.msra.mxu1 %v3095_v24  ;;  %v3151_v22 = vcombine.low %v181_v11, %v185_v12  ;;  %v3158_v24 = vcombine.high %v188_v17, %v192_v18  ;;  %v249_v17 = vld [vmem:[#allocation2 + $0x678] sm:$0xff] }
 0x114   :  { %2710 = vmatprep.subr.bf16.mxu0 %v3102_v25  ;;  %2833 = vmatprep.subr.bf16.mxu1 %v3104_v26  ;;  %v3160_v25 = vcombine.high %v189_v19, %v193_v20  ;;  %v196_v26 = vld [vmem:[#allocation2 + $0x4d0] sm:$0xff] }
 0x115   :  { %v3165_v36 = vcombine.low %v196_v26, %v200_v9 }
 0x117   :  { %2711 = vmatpush1.bf16.msra.mxu0 %v3101_v31  ;;  %2834 = vmatpush1.bf16.msra.mxu1 %v3103_v63  ;;  %v3166_v31 = vcombine.high %v196_v26, %v200_v9  ;;  %v3168_v63 = vcombine.high %v197_v27, %v201_v28  ;;  %v257_v26 = vld [vmem:[#allocation2 + $0x6b8] sm:$0xff] }
 0x118   :  { %2712 = vmatprep.subr.bf16.mxu0 %v3110_v59  ;;  %2835 = vmatprep.subr.bf16.mxu1 %v3112_v33  ;;  %v204_v59 = vld [vmem:[#allocation2 + $0x510] sm:$0xff] }
 0x119   :  { %v208_v33 = vld [vmem:[#allocation2 + $0x530] sm:$0xff] }
 0x11a   :  { %v3173_v45 = vcombine.low %v204_v59, %v208_v33 }
 0x11b   :  { %2713 = vmatpush1.bf16.msra.mxu0 %v3109_v39  ;;  %2836 = vmatpush1.bf16.msra.mxu1 %v3111_v40  ;;  %v3174_v39 = vcombine.high %v204_v59, %v208_v33  ;;  %v212_v40 = vld [vmem:[#allocation2 + $0x550] sm:$0xff]  ;;  %v265_v59 = vld [vmem:[#allocation2 + $0x6f8] sm:$0xff] }
 0x11c   :  { %2714 = vmatprep.subr.bf16.mxu0 %v3118_v41  ;;  %2837 = vmatprep.subr.bf16.mxu1 %v3120_v42  ;;  %v216_v41 = vld [vmem:[#allocation2 + $0x570] sm:$0xff]  ;;  %v213_v42 = vld [vmem:[#allocation2 + $0x558] sm:$0xff] }
 0x11d   :  { %v3182_v47 = vcombine.high %v212_v40, %v216_v41  ;;  %v3181_v55 = vcombine.low %v212_v40, %v216_v41  ;;  %v3183_v56 = vcombine.low %v213_v42, %v217_v43  ;;  %v273_v40 = vld [vmem:[#allocation2 + $0x738] sm:$0xff] }
 0x11f   :  { %2715 = vmatpush1.bf16.msra.mxu0 %v3117_v49  ;;  %2838 = vmatpush1.bf16.msra.mxu1 %v3119_v50  ;;  %v3184_v49 = vcombine.high %v213_v42, %v217_v43  ;;  %v220_v50 = vld [vmem:[#allocation2 + $0x590] sm:$0xff] }
 0x120   :  { %2716 = vmatprep.subr.bf16.mxu0 %v3126_v51  ;;  %2839 = vmatprep.subr.bf16.mxu1 %v3128_v52  ;;  %v224_v51 = vld [vmem:[#allocation2 + $0x5b0] sm:$0xff]  ;;  %v221_v52 = vld [vmem:[#allocation2 + $0x598] sm:$0xff] }
 0x121   :  { %v3190_v57 = vcombine.high %v220_v50, %v224_v51  ;;  %v3189_v2 = vcombine.low %v220_v50, %v224_v51  ;;  %v3191_v3 = vcombine.low %v221_v52, %v225_v54  ;;  %v281_v50 = vld [vmem:[#allocation2 + $0x778] sm:$0xff] }
 0x123   :  { %2717 = vmatpush1.bf16.msra.mxu0 %v3125_v60  ;;  %2840 = vmatpush1.bf16.msra.mxu1 %v3127_v61  ;;  %v3192_v60 = vcombine.high %v221_v52, %v225_v54  ;;  %v228_v61 = vld [vmem:[#allocation2 + $0x5d0] sm:$0xff] }
 0x124   :  { %2718 = vmatprep.subr.bf16.mxu0 %v3134_v62  ;;  %2841 = vmatprep.subr.bf16.mxu1 %v3136_v0  ;;  %v232_v62 = vld [vmem:[#allocation2 + $0x5f0] sm:$0xff]  ;;  %v229_v0 = vld [vmem:[#allocation2 + $0x5d8] sm:$0xff] }
 0x125   :  { %v3198_v4 = vcombine.high %v228_v61, %v232_v62  ;;  %v3197_v10 = vcombine.low %v228_v61, %v232_v62  ;;  %v3199_v11 = vcombine.low %v229_v0, %v233_v1  ;;  %v289_v61 = vld [vmem:[#allocation2 + $0x7b8] sm:$0xff] }
 0x127   :  { %2719 = vmatpush1.bf16.msra.mxu0 %v3133_v5  ;;  %2842 = vmatpush1.bf16.msra.mxu1 %v3135_v6  ;;  %v3200_v5 = vcombine.high %v229_v0, %v233_v1  ;;  %v236_v6 = vld [vmem:[#allocation2 + $0x610] sm:$0xff] }
 0x128   :  { %2729 = vmatprep.subr.bf16.mxu0 %v3142_v29  ;;  %2852 = vmatprep.subr.bf16.mxu1 %v3144_v7  ;;  %v240_v29 = vld [vmem:[#allocation2 + $0x630] sm:$0xff]  ;;  %v237_v7 = vld [vmem:[#allocation2 + $0x618] sm:$0xff] }
 0x129   :  { %v3206_v12 = vcombine.high %v236_v6, %v240_v29  ;;  %v3205_v18 = vcombine.low %v236_v6, %v240_v29  ;;  %v297_v6 = vld [vmem:[#allocation2 + $0x7f8] sm:$0xff] }
 0x12a   :  { %2721 = vmatmul.mubr.bf16.vlgmr.msra.gmra.mrb[4].mxu0 %v3585_v23  ;;  %2844 = vmatmul.mubr.bf16.vlgmr.msra.gmra.mrb[4].mxu1 %v3585_v23  ;;  %v3159_v23 = vcombine.low %v189_v19, %v193_v20  ;;  %v3207_v19 = vcombine.low %v237_v7, %v241_v8 }
 0x12b   :  { %2730 = vmatpush1.bf16.msra.mxu0 %v3141_v13  ;;  %2853 = vmatpush1.bf16.msra.mxu1 %v3143_v14  ;;  %v3208_v13 = vcombine.high %v237_v7, %v241_v8  ;;  %v244_v14 = vld [vmem:[#allocation2 + $0x650] sm:$0xff] }
 0x12c   :  { %2731 = vmatprep.subr.bf16.mxu0 %v3150_v15  ;;  %2854 = vmatprep.subr.bf16.mxu1 %v3152_v16  ;;  %v248_v15 = vld [vmem:[#allocation2 + $0x670] sm:$0xff]  ;;  %v245_v16 = vld [vmem:[#allocation2 + $0x658] sm:$0xff] }
 0x12d   :  { %2761 = vmatprep.mubr.bf16.mxu0 %v3589_v32  ;;  %2884 = vmatprep.mubr.bf16.mxu1 %v3589_v32  ;;  %v3176_v32 = vcombine.high %v205_v34, %v209_v35  ;;  %v3214_v20 = vcombine.high %v244_v14, %v248_v15  ;;  %v3213_v9 = vcombine.low %v244_v14, %v248_v15  ;;  %v305_v14 = vld [vmem:[#allocation2 + $0x838] sm:$0xff] }
 0x12e   :  { %v3215_v27 = vcombine.low %v245_v16, %v249_v17 }
 0x12f   :  { %2732 = vmatpush1.bf16.msra.mxu0 %v3149_v21  ;;  %2855 = vmatpush1.bf16.msra.mxu1 %v3151_v22  ;;  %v3216_v21 = vcombine.high %v245_v16, %v249_v17  ;;  %v252_v22 = vld [vmem:[#allocation2 + $0x690] sm:$0xff] }
 0x130   :  { %2733 = vmatprep.subr.bf16.mxu0 %v3158_v24  ;;  %2856 = vmatprep.subr.bf16.mxu1 %v3160_v25  ;;  %v256_v24 = vld [vmem:[#allocation2 + $0x6b0] sm:$0xff]  ;;  %v253_v25 = vld [vmem:[#allocation2 + $0x698] sm:$0xff] }
 0x131   :  { %v3222_v28 = vcombine.high %v252_v22, %v256_v24  ;;  %v3221_v33 = vcombine.low %v252_v22, %v256_v24  ;;  %v3223_v34 = vcombine.low %v253_v25, %v257_v26  ;;  %v313_v22 = vld [vmem:[#allocation2 + $0x878] sm:$0xff] }
 0x133   :  { %2734 = vmatpush1.bf16.msra.mxu0 %v3157_v30  ;;  %2857 = vmatpush1.bf16.msra.mxu1 %v3159_v23  ;;  %v3224_v30 = vcombine.high %v253_v25, %v257_v26  ;;  %v260_v23 = vld [vmem:[#allocation2 + $0x6d0] sm:$0xff] }
 0x134   :  { %2735 = vmatprep.subr.bf16.mxu0 %v3166_v31  ;;  %2858 = vmatprep.subr.bf16.mxu1 %v3168_v63  ;;  %v264_v31 = vld [vmem:[#allocation2 + $0x6f0] sm:$0xff]  ;;  %v261_v63 = vld [vmem:[#allocation2 + $0x6d8] sm:$0xff] }
 0x135   :  { %v3230_v35 = vcombine.high %v260_v23, %v264_v31  ;;  %v3229_v41 = vcombine.low %v260_v23, %v264_v31  ;;  %v3231_v42 = vcombine.low %v261_v63, %v265_v59  ;;  %v321_v23 = vld [vmem:[#allocation2 + $0x8b8] sm:$0xff] }
 0x137   :  { %2736 = vmatpush1.bf16.msra.mxu0 %v3165_v36  ;;  %2859 = vmatpush1.bf16.msra.mxu1 %v3167_v37  ;;  %v3232_v36 = vcombine.high %v261_v63, %v265_v59  ;;  %v268_v37 = vld [vmem:[#allocation2 + $0x710] sm:$0xff] }
 0x138   :  { %2737 = vmatprep.subr.bf16.mxu0 %v3174_v39  ;;  %2860 = vmatprep.subr.bf16.mxu1 %v3176_v32  ;;  %v272_v39 = vld [vmem:[#allocation2 + $0x730] sm:$0xff]  ;;  %v269_v32 = vld [vmem:[#allocation2 + $0x718] sm:$0xff] }
 0x139   :  { %v3238_v43 = vcombine.high %v268_v37, %v272_v39  ;;  %v3237_v51 = vcombine.low %v268_v37, %v272_v39  ;;  %v3239_v52 = vcombine.low %v269_v32, %v273_v40  ;;  %v329_v37 = vld [vmem:[#allocation2 + $0x8f8] sm:$0xff] }
 0x13b   :  { %2738 = vmatpush1.bf16.msra.mxu0 %v3173_v45  ;;  %2861 = vmatpush1.bf16.msra.mxu1 %v3175_v46  ;;  %v3240_v45 = vcombine.high %v269_v32, %v273_v40  ;;  %v276_v46 = vld [vmem:[#allocation2 + $0x750] sm:$0xff] }
 0x13c   :  { %2739 = vmatprep.subr.bf16.mxu0 %v3182_v47  ;;  %2862 = vmatprep.subr.bf16.mxu1 %v3184_v49  ;;  %v280_v47 = vld [vmem:[#allocation2 + $0x770] sm:$0xff]  ;;  %v277_v49 = vld [vmem:[#allocation2 + $0x758] sm:$0xff] }
 0x13d   :  { %v3246_v54 = vcombine.high %v276_v46, %v280_v47  ;;  %v3245_v62 = vcombine.low %v276_v46, %v280_v47  ;;  %v3247_v0 = vcombine.low %v277_v49, %v281_v50 }
 0x13f   :  { %2740 = vmatpush1.bf16.msra.mxu0 %v3181_v55  ;;  %2863 = vmatpush1.bf16.msra.mxu1 %v3183_v56  ;;  %v3248_v55 = vcombine.high %v277_v49, %v281_v50  ;;  %v284_v56 = vld [vmem:[#allocation2 + $0x790] sm:$0xff] }
 0x140   :  { %2741 = vmatprep.subr.bf16.mxu0 %v3190_v57  ;;  %2864 = vmatprep.subr.bf16.mxu1 %v3192_v60  ;;  %v288_v57 = vld [vmem:[#allocation2 + $0x7b0] sm:$0xff]  ;;  %v285_v60 = vld [vmem:[#allocation2 + $0x798] sm:$0xff] }
 0x141   :  { %v3254_v1 = vcombine.high %v284_v56, %v288_v57  ;;  %v3253_v29 = vcombine.low %v284_v56, %v288_v57  ;;  %v3255_v7 = vcombine.low %v285_v60, %v289_v61  ;;  %v340_v50 = vld [vmem:[#allocation2 + $0x950] sm:$0xff] }
 0x143   :  { %2742 = vmatpush1.bf16.msra.mxu0 %v3189_v2  ;;  %2865 = vmatpush1.bf16.msra.mxu1 %v3191_v3  ;;  %v3256_v2 = vcombine.high %v285_v60, %v289_v61  ;;  %v292_v3 = vld [vmem:[#allocation2 + $0x7d0] sm:$0xff] }
 0x144   :  { %2743 = vmatprep.subr.bf16.mxu0 %v3198_v4  ;;  %2866 = vmatprep.subr.bf16.mxu1 %v3200_v5  ;;  %v296_v4 = vld [vmem:[#allocation2 + $0x7f0] sm:$0xff]  ;;  %v293_v5 = vld [vmem:[#allocation2 + $0x7d8] sm:$0xff] }
 0x145   :  { %v3262_v8 = vcombine.high %v292_v3, %v296_v4  ;;  %v3261_v15 = vcombine.low %v292_v3, %v296_v4  ;;  %v3263_v16 = vcombine.low %v293_v5, %v297_v6  ;;  %v348_v61 = vld [vmem:[#allocation2 + $0x990] sm:$0xff] }
 0x147   :  { %2744 = vmatpush1.bf16.msra.mxu0 %v3197_v10  ;;  %2867 = vmatpush1.bf16.msra.mxu1 %v3199_v11  ;;  %v3264_v10 = vcombine.high %v293_v5, %v297_v6  ;;  %v300_v11 = vld [vmem:[#allocation2 + $0x810] sm:$0xff] }
 0x148   :  { %2745 = vmatprep.subr.bf16.mxu0 %v3206_v12  ;;  %2868 = vmatprep.subr.bf16.mxu1 %v3208_v13  ;;  %v304_v12 = vld [vmem:[#allocation2 + $0x830] sm:$0xff]  ;;  %v301_v13 = vld [vmem:[#allocation2 + $0x818] sm:$0xff] }
 0x149   :  { %v3270_v17 = vcombine.high %v300_v11, %v304_v12  ;;  %v3269_v24 = vcombine.low %v300_v11, %v304_v12  ;;  %v3271_v25 = vcombine.low %v301_v13, %v305_v14  ;;  %v356_v6 = vld [vmem:[#allocation2 + $0x9d0] sm:$0xff] }
 0x14b   :  { %2746 = vmatpush1.bf16.msra.mxu0 %v3205_v18  ;;  %2869 = vmatpush1.bf16.msra.mxu1 %v3207_v19  ;;  %v3272_v18 = vcombine.high %v301_v13, %v305_v14  ;;  %v308_v19 = vld [vmem:[#allocation2 + $0x850] sm:$0xff] }
 0x14c   :  { %2747 = vmatprep.subr.bf16.mxu0 %v3214_v20  ;;  %2870 = vmatprep.subr.bf16.mxu1 %v3216_v21  ;;  %v312_v20 = vld [vmem:[#allocation2 + $0x870] sm:$0xff]  ;;  %v309_v21 = vld [vmem:[#allocation2 + $0x858] sm:$0xff] }
 0x14d   :  { %v3278_v26 = vcombine.high %v308_v19, %v312_v20  ;;  %v3277_v31 = vcombine.low %v308_v19, %v312_v20  ;;  %v3279_v63 = vcombine.low %v309_v21, %v313_v22  ;;  %v364_v14 = vld [vmem:[#allocation2 + $0xa10] sm:$0xff] }
 0x14f   :  { %2748 = vmatpush1.bf16.msra.mxu0 %v3213_v9  ;;  %2871 = vmatpush1.bf16.msra.mxu1 %v3215_v27  ;;  %v3280_v9 = vcombine.high %v309_v21, %v313_v22  ;;  %v316_v27 = vld [vmem:[#allocation2 + $0x890] sm:$0xff] }
 0x150   :  { %2749 = vmatprep.subr.bf16.mxu0 %v3222_v28  ;;  %2872 = vmatprep.subr.bf16.mxu1 %v3224_v30  ;;  %v320_v28 = vld [vmem:[#allocation2 + $0x8b0] sm:$0xff]  ;;  %v317_v30 = vld [vmem:[#allocation2 + $0x898] sm:$0xff] }
 0x151   :  { %v3286_v59 = vcombine.high %v316_v27, %v320_v28  ;;  %v3285_v39 = vcombine.low %v316_v27, %v320_v28  ;;  %v372_v22 = vld [vmem:[#allocation2 + $0xa50] sm:$0xff] }
 0x153   :  { %2750 = vmatpush1.bf16.msra.mxu0 %v3221_v33  ;;  %2873 = vmatpush1.bf16.msra.mxu1 %v3223_v34  ;;  %v3288_v33 = vcombine.high %v317_v30, %v321_v23  ;;  %v324_v34 = vld [vmem:[#allocation2 + $0x8d0] sm:$0xff] }
 0x154   :  { %2751 = vmatprep.subr.bf16.mxu0 %v3230_v35  ;;  %2874 = vmatprep.subr.bf16.mxu1 %v3232_v36  ;;  %v328_v35 = vld [vmem:[#allocation2 + $0x8f0] sm:$0xff]  ;;  %v325_v36 = vld [vmem:[#allocation2 + $0x8d8] sm:$0xff] }
 0x155   :  { %v3294_v32 = vcombine.high %v324_v34, %v328_v35  ;;  %v3296_v40 = vcombine.high %v325_v36, %v329_v37  ;;  %v3293_v46 = vcombine.low %v324_v34, %v328_v35  ;;  %v3295_v47 = vcombine.low %v325_v36, %v329_v37  ;;  %v388_v37 = vld [vmem:[#allocation2 + $0xad0] sm:$0xff] }
 0x157   :  { %2752 = vmatpush1.bf16.msra.mxu0 %v3229_v41  ;;  %2875 = vmatpush1.bf16.msra.mxu1 %v3231_v42  ;;  %v332_v41 = vld [vmem:[#allocation2 + $0x910] sm:$0xff] }
 0x158   :  { %2753 = vmatprep.subr.bf16.mxu0 %v3238_v43  ;;  %2876 = vmatprep.subr.bf16.mxu1 %v3240_v45  ;;  %v336_v42 = vld [vmem:[#allocation2 + $0x930] sm:$0xff]  ;;  %v333_v43 = vld [vmem:[#allocation2 + $0x918] sm:$0xff] }
 0x159   :  { %v337_v45 = vld [vmem:[#allocation2 + $0x938] sm:$0xff]  ;;  %v3302_v49 = vcombine.high %v332_v41, %v336_v42 }
 0x15a   :  { %v3303_v56 = vcombine.low %v333_v43, %v337_v45 }
 0x15b   :  { %2754 = vmatpush1.bf16.msra.mxu0 %v3237_v51  ;;  %2877 = vmatpush1.bf16.msra.mxu1 %v3239_v52  ;;  %v344_v51 = vld [vmem:[#allocation2 + $0x970] sm:$0xff]  ;;  %v341_v52 = vld [vmem:[#allocation2 + $0x958] sm:$0xff] }
 0x15c   :  { %2755 = vmatprep.subr.bf16.mxu0 %v3246_v54  ;;  %2878 = vmatprep.subr.bf16.mxu1 %v3248_v55  ;;  %v345_v54 = vld [vmem:[#allocation2 + $0x978] sm:$0xff]  ;;  %v3301_v55 = vcombine.low %v332_v41, %v336_v42  ;;  %v3310_v57 = vcombine.high %v340_v50, %v344_v51 }
 0x15d   :  { %v3312_v60 = vcombine.high %v341_v52, %v345_v54  ;;  %v3311_v3 = vcombine.low %v341_v52, %v345_v54  ;;  %v404_v54 = vld [vmem:[#allocation2 + $0xb50] sm:$0xff] }
 0x15f   :  { %2756 = vmatpush1.bf16.msra.mxu0 %v3245_v62  ;;  %2879 = vmatpush1.bf16.msra.mxu1 %v3247_v0  ;;  %v352_v62 = vld [vmem:[#allocation2 + $0x9b0] sm:$0xff]  ;;  %v349_v0 = vld [vmem:[#allocation2 + $0x998] sm:$0xff] }
 0x160   :  { %2757 = vmatprep.subr.bf16.mxu0 %v3254_v1  ;;  %2880 = vmatprep.subr.bf16.mxu1 %v3256_v2  ;;  %v353_v1 = vld [vmem:[#allocation2 + $0x9b8] sm:$0xff]  ;;  %v3309_v2 = vcombine.low %v340_v50, %v344_v51  ;;  %v3318_v4 = vcombine.high %v348_v61, %v352_v62 }
 0x161   :  { %v3320_v5 = vcombine.high %v349_v0, %v353_v1  ;;  %v3319_v11 = vcombine.low %v349_v0, %v353_v1  ;;  %v412_v1 = vld [vmem:[#allocation2 + $0xb90] sm:$0xff] }
 0x163   :  { %2758 = vmatpush1.bf16.msra.mxu0 %v3253_v29  ;;  %2881 = vmatpush1.bf16.msra.mxu1 %v3255_v7  ;;  %v360_v29 = vld [vmem:[#allocation2 + $0x9f0] sm:$0xff]  ;;  %v357_v7 = vld [vmem:[#allocation2 + $0x9d8] sm:$0xff] }
 0x164   :  { %2759 = vmatprep.subr.bf16.mxu0 %v3262_v8  ;;  %2882 = vmatprep.subr.bf16.mxu1 %v3264_v10  ;;  %v361_v8 = vld [vmem:[#allocation2 + $0x9f8] sm:$0xff]  ;;  %v3317_v10 = vcombine.low %v348_v61, %v352_v62  ;;  %v3326_v12 = vcombine.high %v356_v6, %v360_v29 }
 0x165   :  { %v3328_v13 = vcombine.high %v357_v7, %v361_v8  ;;  %v3327_v19 = vcombine.low %v357_v7, %v361_v8  ;;  %v420_v8 = vld [vmem:[#allocation2 + $0xbd0] sm:$0xff] }
 0x167   :  { %2760 = vmatpush1.bf16.msra.mxu0 %v3261_v15  ;;  %2883 = vmatpush1.bf16.msra.mxu1 %v3263_v16  ;;  %v368_v15 = vld [vmem:[#allocation2 + $0xa30] sm:$0xff]  ;;  %v365_v16 = vld [vmem:[#allocation2 + $0xa18] sm:$0xff] }
 0x168   :  { %2770 = vmatprep.subr.bf16.mxu0 %v3270_v17  ;;  %2893 = vmatprep.subr.bf16.mxu1 %v3272_v18  ;;  %v369_v17 = vld [vmem:[#allocation2 + $0xa38] sm:$0xff]  ;;  %v3325_v18 = vcombine.low %v356_v6, %v360_v29  ;;  %v3334_v20 = vcombine.high %v364_v14, %v368_v15 }
 0x169   :  { %v3336_v21 = vcombine.high %v365_v16, %v369_v17  ;;  %v3335_v27 = vcombine.low %v365_v16, %v369_v17 }
 0x16a   :  { %2762 = vmatmul.mubr.bf16.vlgmr.msra.gmra.mrb[4].mxu0 %v3604_v38  ;;  %2885 = vmatmul.mubr.bf16.vlgmr.msra.gmra.mrb[4].mxu1 %v3604_v38  ;;  %v3287_v38 = vcombine.low %v317_v30, %v321_v23  ;;  %v380_v23 = vld [vmem:[#allocation2 + $0xa90] sm:$0xff] }
 0x16b   :  { %2771 = vmatpush1.bf16.msra.mxu0 %v3269_v24  ;;  %2894 = vmatpush1.bf16.msra.mxu1 %v3271_v25  ;;  %v376_v24 = vld [vmem:[#allocation2 + $0xa70] sm:$0xff]  ;;  %v373_v25 = vld [vmem:[#allocation2 + $0xa58] sm:$0xff] }
 0x16c   :  { %2772 = vmatprep.subr.bf16.mxu0 %v3278_v26  ;;  %2895 = vmatprep.subr.bf16.mxu1 %v3280_v9  ;;  %v377_v26 = vld [vmem:[#allocation2 + $0xa78] sm:$0xff]  ;;  %v3333_v9 = vcombine.low %v364_v14, %v368_v15  ;;  %v3342_v28 = vcombine.high %v372_v22, %v376_v24 }
 0x16d   :  { %2802 = vmatprep.mubr.bf16.mxu0 %v3607_v48  ;;  %2925 = vmatprep.mubr.bf16.mxu1 %v3607_v48  ;;  %v3304_v48 = vcombine.high %v333_v43, %v337_v45  ;;  %v3344_v30 = vcombine.high %v373_v25, %v377_v26  ;;  %v3343_v34 = vcombine.low %v373_v25, %v377_v26  ;;  %v396_v45 = vld [vmem:[#allocation2 + $0xb10] sm:$0xff] }
 0x16f   :  { %2773 = vmatpush1.bf16.msra.mxu0 %v3277_v31  ;;  %2896 = vmatpush1.bf16.msra.mxu1 %v3279_v63  ;;  %v384_v31 = vld [vmem:[#allocation2 + $0xab0] sm:$0xff]  ;;  %v381_v63 = vld [vmem:[#allocation2 + $0xa98] sm:$0xff] }
 0x170   :  { %2774 = vmatprep.subr.bf16.mxu0 %v3286_v59  ;;  %2897 = vmatprep.subr.bf16.mxu1 %v3288_v33  ;;  %v385_v59 = vld [vmem:[#allocation2 + $0xab8] sm:$0xff]  ;;  %v3341_v33 = vcombine.low %v372_v22, %v376_v24  ;;  %v3350_v35 = vcombine.high %v380_v23, %v384_v31  ;;  %v2408_v22 = vsub.s32 1, %v3562_v44  ;;  %v2416_v24 = vsub.s32 3, %v3562_v44 }
 0x171   :  { %v3352_v36 = vcombine.high %v381_v63, %v385_v59  ;;  %v3351_v41 = vcombine.low %v381_v63, %v385_v59 }
 0x173   :  { %2775 = vmatpush1.bf16.msra.mxu0 %v3285_v39  ;;  %2898 = vmatpush1.bf16.msra.mxu1 %v3287_v38  ;;  %v392_v39 = vld [vmem:[#allocation2 + $0xaf0] sm:$0xff]  ;;  %v389_v38 = vld [vmem:[#allocation2 + $0xad8] sm:$0xff] }
 0x174   :  { %2776 = vmatprep.subr.bf16.mxu0 %v3294_v32  ;;  %2899 = vmatprep.subr.bf16.mxu1 %v3296_v40  ;;  %v393_v32 = vld [vmem:[#allocation2 + $0xaf8] sm:$0xff]  ;;  %v3349_v40 = vcombine.low %v380_v23, %v384_v31  ;;  %v3358_v42 = vcombine.high %v388_v37, %v392_v39 }
 0x175   :  { %v3360_v43 = vcombine.high %v389_v38, %v393_v32  ;;  %v3359_v50 = vcombine.low %v389_v38, %v393_v32 }
 0x177   :  { %2777 = vmatpush1.bf16.msra.mxu0 %v3293_v46  ;;  %2900 = vmatpush1.bf16.msra.mxu1 %v3295_v47  ;;  %v400_v46 = vld [vmem:[#allocation2 + $0xb30] sm:$0xff]  ;;  %v397_v47 = vld [vmem:[#allocation2 + $0xb18] sm:$0xff] }
 0x178   :  { %2778 = vmatprep.subr.bf16.mxu0 %v3302_v49  ;;  %2901 = vmatprep.subr.bf16.mxu1 %v3304_v48  ;;  %v401_v49 = vld [vmem:[#allocation2 + $0xb38] sm:$0xff]  ;;  %v3357_v48 = vcombine.low %v388_v37, %v392_v39  ;;  %v3366_v51 = vcombine.high %v396_v45, %v400_v46 }
 0x179   :  { %v3368_v52 = vcombine.high %v397_v47, %v401_v49  ;;  %v3367_v61 = vcombine.low %v397_v47, %v401_v49 }
 0x17b   :  { %2779 = vmatpush1.bf16.msra.mxu0 %v3301_v55  ;;  %2902 = vmatpush1.bf16.msra.mxu1 %v3303_v56  ;;  %v408_v55 = vld [vmem:[#allocation2 + $0xb70] sm:$0xff]  ;;  %v405_v56 = vld [vmem:[#allocation2 + $0xb58] sm:$0xff] }
 0x17c   :  { %2780 = vmatprep.subr.bf16.mxu0 %v3310_v57  ;;  %2903 = vmatprep.subr.bf16.mxu1 %v3312_v60  ;;  %v409_v57 = vld [vmem:[#allocation2 + $0xb78] sm:$0xff]  ;;  %v3365_v60 = vcombine.low %v396_v45, %v400_v46  ;;  %v3374_v62 = vcombine.high %v404_v54, %v408_v55  ;;  %v2424_v45 = vsub.s32 5, %v3562_v44  ;;  %v2432_v46 = vsub.s32 7, %v3562_v44 }
 0x17d   :  { %v3376_v0 = vcombine.high %v405_v56, %v409_v57  ;;  %v3375_v6 = vcombine.low %v405_v56, %v409_v57 }
 0x17f   :  { %2781 = vmatpush1.bf16.msra.mxu0 %v3309_v2  ;;  %2904 = vmatpush1.bf16.msra.mxu1 %v3311_v3  ;;  %v416_v2 = vld [vmem:[#allocation2 + $0xbb0] sm:$0xff]  ;;  %v413_v3 = vld [vmem:[#allocation2 + $0xb98] sm:$0xff] }
 0x180   :  { %2782 = vmatprep.subr.bf16.mxu0 %v3318_v4  ;;  %2905 = vmatprep.subr.bf16.mxu1 %v3320_v5  ;;  %v417_v4 = vld [vmem:[#allocation2 + $0xbb8] sm:$0xff]  ;;  %v3373_v5 = vcombine.low %v404_v54, %v408_v55  ;;  %v3382_v29 = vcombine.high %v412_v1, %v416_v2 }
 0x181   :  { %v3384_v7 = vcombine.high %v413_v3, %v417_v4  ;;  %v3383_v14 = vcombine.low %v413_v3, %v417_v4 }
 0x183   :  { %2783 = vmatpush1.bf16.msra.mxu0 %v3317_v10  ;;  %2906 = vmatpush1.bf16.msra.mxu1 %v3319_v11  ;;  %v424_v10 = vld [vmem:[#allocation2 + $0xbf0] sm:$0xff]  ;;  %v421_v11 = vld [vmem:[#allocation2 + $0xbd8] sm:$0xff] }
 0x184   :  { %2784 = vmatprep.subr.bf16.mxu0 %v3326_v12  ;;  %2907 = vmatprep.subr.bf16.mxu1 %v3328_v13  ;;  %v425_v12 = vld [vmem:[#allocation2 + $0xbf8] sm:$0xff]  ;;  %v3381_v13 = vcombine.low %v412_v1, %v416_v2  ;;  %v3390_v15 = vcombine.high %v420_v8, %v424_v10  ;;  %v3389_v17 = vcombine.low %v420_v8, %v424_v10 }
 0x185   :  { %v3392_v16 = vcombine.high %v421_v11, %v425_v12 }
 0x187   :  { %2785 = vmatpush1.bf16.msra.mxu0 %v3325_v18  ;;  %2908 = vmatpush1.bf16.msra.mxu1 %v3327_v19  ;;  %v3391_v18 = vcombine.low %v421_v11, %v425_v12  ;;  %v2404_v19 = vsub.s32 0, %v3562_v44 }
 0x188   :  { %2786 = vmatprep.subr.bf16.mxu0 %v3334_v20  ;;  %2909 = vmatprep.subr.bf16.mxu1 %v3336_v21  ;;  %v426_v20 = vld [vmem:[#allocation5] sm:$0xff]  ;;  %v2412_v21 = vsub.s32 2, %v3562_v44 }
 0x189   :  { %v2405_v25 = vrot.slane %v426_v20, %v2404_v19 }
 0x18a   :  { %v2413_v26 = vrot.slane %v426_v20, %v2412_v21 }
 0x18b   :  { %2787 = vmatpush1.bf16.msra.mxu0 %v3333_v9  ;;  %2910 = vmatpush1.bf16.msra.mxu1 %v3335_v27  ;;  %v2409_v9 = vrot.slane %v426_v20, %v2408_v22  ;;  %v2417_v27 = vrot.slane %v426_v20, %v2416_v24 }
 0x18c   :  { %2788 = vmatprep.subr.bf16.mxu0 %v3342_v28  ;;  %2911 = vmatprep.subr.bf16.mxu1 %v3344_v30 }
 0x18f   :  { %2789 = vmatpush1.bf16.msra.mxu0 %v3341_v33  ;;  %2912 = vmatpush1.bf16.msra.mxu1 %v3343_v34 }
 0x190   :  { %2790 = vmatprep.subr.bf16.mxu0 %v3350_v35  ;;  %2913 = vmatprep.subr.bf16.mxu1 %v3352_v36 }
 0x193   :  { %2791 = vmatpush1.bf16.msra.mxu0 %v3349_v40  ;;  %2914 = vmatpush1.bf16.msra.mxu1 %v3351_v41 }
 0x194   :  { %2792 = vmatprep.subr.bf16.mxu0 %v3358_v42  ;;  %2915 = vmatprep.subr.bf16.mxu1 %v3360_v43  ;;  %v2420_v42 = vsub.s32 4, %v3562_v44  ;;  %v2428_v43 = vsub.s32 6, %v3562_v44 }
 0x196   :  { %v2421_v47 = vrot.slane %v426_v20, %v2420_v42  ;;  %v2429_v49 = vrot.slane %v426_v20, %v2428_v43 }
 0x197   :  { %2793 = vmatpush1.bf16.msra.mxu0 %v3357_v48  ;;  %2916 = vmatpush1.bf16.msra.mxu1 %v3359_v50  ;;  %v2425_v48 = vrot.slane %v426_v20, %v2424_v45  ;;  %v2433_v50 = vrot.slane %v426_v20, %v2432_v46 }
 0x198   :  { %2794 = vmatprep.subr.bf16.mxu0 %v3366_v51  ;;  %2917 = vmatprep.subr.bf16.mxu1 %v3368_v52 }
 0x19b   :  { %2795 = vmatpush1.bf16.msra.mxu0 %v3365_v60  ;;  %2918 = vmatpush1.bf16.msra.mxu1 %v3367_v61 }
 0x19c   :  { %2796 = vmatprep.subr.bf16.mxu0 %v3374_v62  ;;  %2919 = vmatprep.subr.bf16.mxu1 %v3376_v0 }
 0x19f   :  { %2797 = vmatpush1.bf16.msra.mxu0 %v3373_v5  ;;  %2920 = vmatpush1.bf16.msra.mxu1 %v3375_v6 }
 0x1a0   :  { %2798 = vmatprep.subr.bf16.mxu0 %v3382_v29  ;;  %2921 = vmatprep.subr.bf16.mxu1 %v3384_v7 }
 0x1a3   :  { %2799 = vmatpush1.bf16.msra.mxu0 %v3381_v13  ;;  %2922 = vmatpush1.bf16.msra.mxu1 %v3383_v14 }
 0x1a4   :  { %2800 = vmatprep.subr.bf16.mxu0 %v3390_v15  ;;  %2923 = vmatprep.subr.bf16.mxu1 %v3392_v16 }
 0x1a7   :  { %2801 = vmatpush1.bf16.msra.mxu0 %v3389_v17  ;;  %2924 = vmatpush1.bf16.msra.mxu1 %v3391_v18 }
 0x1aa   :  { %2803 = vmatmul.mubr.bf16.vlgmr.msra.gmra.mrb[4].mxu0 %v3615_v58  ;;  %2926 = vmatmul.mubr.bf16.vlgmr.msra.gmra.mrb[4].mxu1 %v3615_v58 }
 0x1bd   :  { %v2558_v28 = vpop.f32.mrb[0].mxu0  ;;  %v2681_v23 = vpop.f32.mrb[0].mxu1 }
 0x1be   :  { %v3393_v30 = vadd.f32 %v2558_v28, %v2405_v25  ;;  %v2560_v31 = vpop.f32.mrb[1].mxu0  ;;  %v3395_v63 = vadd.f32 %v2681_v23, %v2413_v26  ;;  %v2683_v58 = vpop.f32.mrb[1].mxu1 }
 0x1bf   :  { %v3394_v59 = vadd.f32 %v2560_v31, %v2409_v9  ;;  %v2562_v33 = vpop.f32.mrb[2].mxu0  ;;  %v3396_v34 = vadd.f32 %v2683_v58, %v2417_v27  ;;  %v2685_v35 = vpop.f32.mrb[2].mxu1 }
 0x1c0   :  { %v2563_v36 = vpop.f32.mrb[3].mxu0  ;;  %v2686_v39 = vpop.f32.mrb[3].mxu1 }
 0x1c1   :  { %v2942_v37 = vcombine.low %v3393_v30, %v3394_v59  ;;  %v2943_v38 = vcombine.low %v3395_v63, %v3396_v34 }
 0x1c3   :  { %v2952_v32 = vrot.slane %v2942_v37, %v3565_v53  ;;  %v2959_v40 = vrot.slane %v2943_v38, %v3565_v53 }
 0x1c5   :  { %v2974_v41 = vcombine.low %v2952_v32, %v2959_v40 }
 0x1c7   :  { %v2982_v29 = vrot.slane %v2974_v41, %v3565_v53 }
 0x27d   :  { %v2804_v51 = vpop.f32.mrb[4].mxu0  ;;  %v2927_v54 = vpop.f32.mrb[4].mxu1 }
 0x27e   :  { %v3397_v52 = vadd.f32 %v2804_v51, %v2421_v47  ;;  %v2806_v55 = vpop.f32.mrb[5].mxu0  ;;  %v3399_v56 = vadd.f32 %v2927_v54, %v2429_v49  ;;  %v2929_v60 = vpop.f32.mrb[5].mxu1 }
 0x27f   :  { %v3398_v57 = vadd.f32 %v2806_v55, %v2425_v48  ;;  %v2808_v61 = vpop.f32.mrb[6].mxu0  ;;  %v3400_v62 = vadd.f32 %v2929_v60, %v2433_v50  ;;  %v2931_v0 = vpop.f32.mrb[6].mxu1 }
 0x280   :  { %v2809_v1 = vpop.f32.mrb[7].mxu0  ;;  %v2932_v3 = vpop.f32.mrb[7].mxu1 }
 0x281   :  { %v2944_v2 = vcombine.low %v3397_v52, %v3398_v57  ;;  %v2945_v4 = vcombine.low %v3399_v56, %v3400_v62 }
 0x283   :  { %v2966_v44 = vrot.slane %v2944_v2, %v3565_v53  ;;  %v2973_v5 = vrot.slane %v2945_v4, %v3565_v53 }
 0x285   :  { %v2975_v6 = vcombine.low %v2966_v44, %v2973_v5 }
 0x287   :  { %v2989_v7 = vrot.slane %v2975_v6, %v3565_v53 }
 0x289   :  { %v2990_v8 = vcombine.low %v2982_v29, %v2989_v7 }
 0x28b   :  { %2992 = vst [vmem:[#allocation7] sm:$0xff] %v2990_v8 }
 0x28c   :  { %3495 = shalt.err (!%p3492_p6)
}
 0x28d   :  { %s3496_s15 = scalar_lea.hbm %s3660_s3, 128 }
 0x28e   :  { %p3497_p7 = scmp.ne.s32.totalorder %s3660_s3, %s3496_s15  ;;  %p3500_p8 = scmp.lt.u32.totalorder %s3496_s15, %s3660_s3 }
 0x290   :  { %p3502_p9 = pnand %p3500_p8, %p3497_p7 }
 0x292   :  { %3505 = shalt.err (!%p3502_p9)
}
 0x293   :  { %3002 = dma.vmem_to_hbm [thread:$0]  %s3000_s11, 128, %s3660_s3, [#allocation4]  }
 0x294   :  { %3510 = dma.done.wait [#allocation4], 128  }
 0x295   :  { %3511 = vsyncadd [#allocation4], 4294967168 }
 0x296   :  { %3006 = vsyncpa [#allocation3], 1 }
 0x297   :  { %3007 = vsyncpa [#allocation6], 1 }
 0x298   :  { %3008 = vsyncpa [#allocation4], 1 }

</bundles_post_ra>
